<compile_context>
chip_gen: v6e
topology: v6e:2x2x1
jax: 0.10.0
libtpu: 0.0.40
codegen_flags: <defaults>
</compile_context>

<pallas_src>
import functools

import jax
import jax.numpy as jnp
from jax.experimental import pallas as pl
from jax.experimental.pallas import tpu as pltpu

# Pad value for point columns beyond P: large enough that padded target points can
# never win the closest-point min (model points are O(1) in metric units).
_PAD_VAL = 1.0e6


def _quat_to_rot(q):
    """(..., 4) wxyz quaternion -> (..., 3, 3) rotation matrix (normalizes q)."""
    q = q / jnp.linalg.norm(q, axis=-1, keepdims=True)
    w, x, y, z = q[..., 0], q[..., 1], q[..., 2], q[..., 3]
    r0 = jnp.stack([w * w + x * x - y * y - z * z, 2 * (x * y - w * z), 2 * (x * z + w * y)], -1)
    r1 = jnp.stack([2 * (x * y + w * z), w * w - x * x + y * y - z * z, 2 * (y * z - w * x)], -1)
    r2 = jnp.stack([2 * (x * z - w * y), 2 * (y * z + w * x), w * w - x * x - y * y + z * z], -1)
    return jnp.stack([r0, r1, r2], -2)


def _ave_dist_loss_kernel(labels_ref,    # SMEM (B,)     int32 : class per item
                          rp_ref,        # SMEM (B*9,)   f32   : row-major 3x3 R_pred per item
                          rt_ref,        # SMEM (B*9,)   f32   : row-major 3x3 R_target per item
                          symf_ref,      # SMEM (B,)     int32 : 1 iff symmetric class
                          pts_ref,       # VMEM (Cp, 8, P_pad) f32, rows 0..2 = x,y,z
                          out_ref,       # VMEM (1, 1, P_pad)  f32 per-point hinge partial sums
                          a_ref, b_ref,  # VMEM (8, P_pad) f32 scratch: staged MXU operands
                          *, margin, B, BB, P_pad):
    g = pl.program_id(0)

    out_ref[...] = jnp.zeros_like(out_ref)

    # Constant rows of the staged MXU operands (rewritten every step: safe under
    # a "parallel" grid on multi-TensorCore chips).
    zeros_tail = jnp.zeros((4, P_pad), jnp.float32)
    a_ref[4:8, :] = zeros_tail
    b_ref[3:4, :] = jnp.full((1, P_pad), -1.0, jnp.float32)
    b_ref[4:8, :] = zeros_tail

    def item_body(n):
        cls = labels_ref[n]
        base = n * 9
        r = [rp_ref[base + k] for k in range(9)]    # scalar loads (SMEM)
        t = [rt_ref[base + k] for k in range(9)]

        pts = pts_ref[cls]                          # (8, P_pad), dynamic class index
        px = pts[0:1, :]                            # lane-dense (1, P_pad)
        py = pts[1:2, :]
        pz = pts[2:3, :]

        # Rotated model points (scalar x vector broadcasts).
        p1x = r[0] * px + r[1] * py + r[2] * pz
        p1y = r[3] * px + r[4] * py + r[5] * pz
        p1z = r[6] * px + r[7] * py + r[8] * pz
        p2x = t[0] * px + t[1] * py + t[2] * pz
        p2y = t[3] * px + t[4] * py + t[5] * pz
        p2z = t[6] * px + t[7] * py + t[8] * pz

        symf = symf_ref[n]

        @pl.when(symf == 0)
        def _nonsym():
            d = (p1x - p2x) ** 2 + (p1y - p2y) ** 2 + (p1z - p2z) ** 2      # (1, P_pad)
            per_pt = jnp.maximum(0.5 * d - margin, 0.0)
            out_ref[...] += per_pt.reshape(1, 1, P_pad)

        @pl.when(symf != 0)
        def _sym():
            # d_min[p] = min_q ||R1 x_p - R2 x_q||^2
            #          = n_p - max_q (2*(R2 x_q).(R1 x_p) - n_q)   (rotations preserve norms)
            # computed via one K=8 MXU matmul of the staged operands:
            #   A = [2*p2x; 2*p2y; 2*p2z; n; 0...]   (8, P_pad), columns indexed by q
            #   Bm = [p1x; p1y; p1z; -1; 0...]        (8, P_pad), columns indexed by p
            #   S = A^T @ Bm  -> S[q, p] = 2*p2_q.p1_p - n_q
            npts = px * px + py * py + pz * pz                              # (1, P_pad)
            a_ref[0:1, :] = 2.0 * p2x
            a_ref[1:2, :] = 2.0 * p2y
            a_ref[2:3, :] = 2.0 * p2z
            a_ref[3:4, :] = npts
            b_ref[0:1, :] = p1x
            b_ref[1:2, :] = p1y
            b_ref[2:3, :] = p1z
            s = jax.lax.dot_general(a_ref[...], b_ref[...],
                                    (((0,), (0,)), ((), ())),
                                    preferred_element_type=jnp.float32)     # (P_pad, P_pad)
            d_min = npts - jnp.max(s, axis=0, keepdims=True)                # (1, P_pad)
            per_pt = jnp.maximum(0.5 * d_min - margin, 0.0)
            out_ref[...] += per_pt.reshape(1, 1, P_pad)

    rem = B % BB
    for j in range(BB):                      # BB is small; unrolled
        n = g * BB + j
        if rem != 0 and j >= rem:
            pl.when(n < B)(functools.partial(item_body, n))
        else:
            item_body(n)


def average_distance_loss2(poses_pred, poses_target, poses_labels, points, symmetry,
                           margin, *, block_b=8):
    assert points.shape[0] == symmetry.shape[0]
    assert poses_pred.shape[-1] == 4
    assert poses_pred.shape == poses_target.shape
    assert poses_pred.shape[0] == poses_labels.shape[0]

    B = poses_pred.shape[0]
    Cp, P, _ = points.shape

    labels = poses_labels.astype(jnp.int32)
    idx = jnp.arange(B)
    # Tiny per-item quaternion -> rotation matrix math stays in the (fused) wrapper;
    # the kernel reads the 9 entries as SMEM scalars.
    rp = _quat_to_rot(poses_pred[idx, labels].astype(jnp.float32)).reshape(B * 9)
    rt = _quat_to_rot(poses_target[idx, labels].astype(jnp.float32)).reshape(B * 9)
    sym_flag = (symmetry[labels] > 0).astype(jnp.int32)

    # Points, transposed to (Cp, 3, P) and padded to (Cp, 8, P_pad): xyz on sublanes
    # 0..2, columns beyond P filled with a huge value so they never win the
    # closest-point min; their own (huge) hinge lands in padded lanes dropped below.
    P_pad = ((P + 127) // 128) * 128
    pts_t = jnp.transpose(points.astype(jnp.float32), (0, 2, 1))                 # (Cp, 3, P)
    pts_t = jnp.pad(pts_t, ((0, 0), (0, 0), (0, P_pad - P)), constant_values=_PAD_VAL)
    pts_full = jnp.pad(pts_t, ((0, 0), (0, 5), (0, 0)))                          # (Cp, 8, P_pad)

    BB = max(1, min(int(block_b), B))
    num_blocks = (B + BB - 1) // BB

    kernel = functools.partial(_ave_dist_loss_kernel, margin=float(margin),
                               B=B, BB=BB, P_pad=P_pad)

    grid_spec = pltpu.PrefetchScalarGridSpec(
        num_scalar_prefetch=0,
        grid=(num_blocks,),
        in_specs=[
            pl.BlockSpec(memory_space=pltpu.MemorySpace.SMEM),    # labels
            pl.BlockSpec(memory_space=pltpu.MemorySpace.SMEM),    # R_pred  (flattened)
            pl.BlockSpec(memory_space=pltpu.MemorySpace.SMEM),    # R_target (flattened)
            pl.BlockSpec(memory_space=pltpu.MemorySpace.SMEM),    # symmetric flags
            pl.BlockSpec((Cp, 8, P_pad), lambda g: (0, 0, 0)),    # points: resident in VMEM
        ],
        out_specs=pl.BlockSpec((1, 1, P_pad), lambda g: (g, 0, 0)),
        scratch_shapes=[pltpu.VMEM((8, P_pad), jnp.float32),
                        pltpu.VMEM((8, P_pad), jnp.float32)],
    )

    partial_sums = pl.pallas_call(
        kernel,
        out_shape=jax.ShapeDtypeStruct((num_blocks, 1, P_pad), jnp.float32),
        grid_spec=grid_spec,
        compiler_params=pltpu.CompilerParams(dimension_semantics=("parallel",)),
    )(labels, rp, rt, sym_flag, pts_full)

    # Drop padded point lanes, reduce, normalize.
    return jnp.sum(partial_sums[:, 0, :P]) * (1.0 / (B * P))


def reference_loss(poses_pred, poses_target, poses_labels, points, symmetry, margin):
    """Pure-JAX reference with identical semantics (for verification)."""
    B = poses_pred.shape[0]
    P = points.shape[1]
    idx = jnp.arange(B)
    labels = poses_labels.astype(jnp.int32)
    Rp = _quat_to_rot(poses_pred[idx, labels])
    Rt = _quat_to_rot(poses_target[idx, labels])
    pts = points[labels]                                         # (B, P, 3)
    p1 = jnp.einsum('bij,bpj->bpi', Rp, pts)
    p2 = jnp.einsum('bij,bpj->bpi', Rt, pts)
    d_diag = jnp.sum((p1 - p2) ** 2, axis=-1)                    # (B, P)
    dmat = jnp.sum((p1[:, :, None, :] - p2[:, None, :, :]) ** 2, axis=-1)
    d_min = jnp.min(dmat, axis=2)
    sym = symmetry[labels][:, None]
    d = jnp.where(sym > 0, d_min, d_diag)
    return jnp.sum(jnp.maximum(0.5 * d - margin, 0.0)) / (B * P)


if __name__ == "__main__":
    key = jax.random.PRNGKey(0)
    B, C, P = 6, 5, 100          # P deliberately not a multiple of 128 to exercise lane padding
    margin = 0.01

    k1, k2, k3 = jax.random.split(key, 3)
    poses_pred = jax.random.normal(k1, (B, C, 4), jnp.float32)
    poses_target = jax.random.normal(k2, (B, C, 4), jnp.float32)
    poses_labels = jnp.array([1, 3, 0, 2, 4, 3], dtype=jnp.int32)
    points = 0.1 * jax.random.normal(k3, (C, P, 3), jnp.float32)
    symmetry = jnp.array([0.0, 1.0, 0.0, 1.0, 0.0], dtype=jnp.float32)

    loss = average_distance_loss2(poses_pred, poses_target, poses_labels,
                                  points, symmetry, margin, block_b=4)
    loss = jax.block_until_ready(loss)

    ref = reference_loss(poses_pred, poses_target, poses_labels, points, symmetry, margin)
    ref = jax.block_until_ready(ref)

    # Tolerance allows for the MXU's default f32 matmul precision on the symmetric path.
    assert jnp.allclose(loss, ref, rtol=2e-2, atol=1e-5), (loss, ref)
    print("KERNEL_OK")
</pallas_src>

<mosaic_0001>
module attributes {stable_mosaic.version = 11 : i64} {
  func.func @_ave_dist_loss_kernel(%arg0: i32, %arg1: memref<6xi32, #tpu.memory_space<smem>>, %arg2: memref<54xf32, #tpu.memory_space<smem>>, %arg3: memref<54xf32, #tpu.memory_space<smem>>, %arg4: memref<6xi32, #tpu.memory_space<smem>>, %arg5: memref<5x8x128xf32, #tpu.memory_space<vmem>>, %arg6: memref<1x1x128xf32, #tpu.memory_space<vmem>>, %arg7: memref<8x128xf32, #tpu.memory_space<vmem>>, %arg8: memref<8x128xf32, #tpu.memory_space<vmem>>) attributes {dimension_semantics = [#tpu.dimension_semantics<parallel>], iteration_bounds = array<i64: 2>, scalar_prefetch = 0 : i64, scratch_operands = 2 : i64, tpu.core_type = #tpu.core_type<tc>, window_params = [{transform_indices = @transform_0, window_bounds = array<i64: 6>}, {transform_indices = @transform_1, window_bounds = array<i64: 54>}, {transform_indices = @transform_2, window_bounds = array<i64: 54>}, {transform_indices = @transform_3, window_bounds = array<i64: 6>}, {pipeline_mode = #tpu.pipeline_mode<synchronous>, transform_indices = @transform_4, window_bounds = array<i64: 5, 8, 128>}, {transform_indices = @transform_5, window_bounds = array<i64: 1, 1, 128>}]} {
    %cst = arith.constant 0.000000e+00 : f32
    %0 = vector.broadcast %cst : f32 to vector<1x1x128xf32>
    %c0 = arith.constant 0 : index
    %c0_0 = arith.constant 0 : index
    %c0_1 = arith.constant 0 : index
    %1 = vector.load %arg6[%c0, %c0_0, %c0_1] : memref<1x1x128xf32, #tpu.memory_space<vmem>>, vector<1x1x128xf32>
    tpu.vector_store %arg6[%c0, %c0_0, %c0_1], %0 {strides = array<i32>} : memref<1x1x128xf32, #tpu.memory_space<vmem>>, vector<1x1x128xf32>,
    %cst_2 = arith.constant 0.000000e+00 : f32
    %2 = vector.broadcast %cst_2 : f32 to vector<4x128xf32>
    %c4 = arith.constant 4 : index
    %c0_3 = arith.constant 0 : index
    %3 = vector.load %arg7[%c4, %c0_3] : memref<8x128xf32, #tpu.memory_space<vmem>>, vector<4x128xf32>
    tpu.vector_store %arg7[%c4, %c0_3], %2 {strides = array<i32>} : memref<8x128xf32, #tpu.memory_space<vmem>>, vector<4x128xf32>,
    %cst_4 = arith.constant -1.000000e+00 : f32
    %4 = vector.broadcast %cst_4 : f32 to vector<1x128xf32>
    %c3 = arith.constant 3 : index
    %c0_5 = arith.constant 0 : index
    %5 = vector.load %arg8[%c3, %c0_5] : memref<8x128xf32, #tpu.memory_space<vmem>>, vector<1x128xf32>
    tpu.vector_store %arg8[%c3, %c0_5], %4 {strides = array<i32>} : memref<8x128xf32, #tpu.memory_space<vmem>>, vector<1x128xf32>,
    %c4_6 = arith.constant 4 : index
    %c0_7 = arith.constant 0 : index
    %6 = vector.load %arg8[%c4_6, %c0_7] : memref<8x128xf32, #tpu.memory_space<vmem>>, vector<4x128xf32>
    tpu.vector_store %arg8[%c4_6, %c0_7], %2 {strides = array<i32>} : memref<8x128xf32, #tpu.memory_space<vmem>>, vector<4x128xf32>,
    %c4_i32 = arith.constant 4 : i32
    %7 = arith.muli %arg0, %c4_i32 : i32
    %c0_i32 = arith.constant 0 : i32
    %8 = arith.addi %7, %c0_i32 : i32
    %9 = arith.index_cast %8 : i32 to index
    %10 = memref.load %arg1[%9] : memref<6xi32, #tpu.memory_space<smem>>
    %c9_i32 = arith.constant 9 : i32
    %11 = arith.muli %8, %c9_i32 : i32
    %c0_i32_8 = arith.constant 0 : i32
    %12 = arith.addi %11, %c0_i32_8 : i32
    %13 = arith.index_cast %12 : i32 to index
    %14 = memref.load %arg2[%13] : memref<54xf32, #tpu.memory_space<smem>>
    %c1_i32 = arith.constant 1 : i32
    %15 = arith.addi %11, %c1_i32 : i32
    %16 = arith.index_cast %15 : i32 to index
    %17 = memref.load %arg2[%16] : memref<54xf32, #tpu.memory_space<smem>>
    %c2_i32 = arith.constant 2 : i32
    %18 = arith.addi %11, %c2_i32 : i32
    %19 = arith.index_cast %18 : i32 to index
    %20 = memref.load %arg2[%19] : memref<54xf32, #tpu.memory_space<smem>>
    %c3_i32 = arith.constant 3 : i32
    %21 = arith.addi %11, %c3_i32 : i32
    %22 = arith.index_cast %21 : i32 to index
    %23 = memref.load %arg2[%22] : memref<54xf32, #tpu.memory_space<smem>>
    %c4_i32_9 = arith.constant 4 : i32
    %24 = arith.addi %11, %c4_i32_9 : i32
    %25 = arith.index_cast %24 : i32 to index
    %26 = memref.load %arg2[%25] : memref<54xf32, #tpu.memory_space<smem>>
    %c5_i32 = arith.constant 5 : i32
    %27 = arith.addi %11, %c5_i32 : i32
    %28 = arith.index_cast %27 : i32 to index
    %29 = memref.load %arg2[%28] : memref<54xf32, #tpu.memory_space<smem>>
    %c6_i32 = arith.constant 6 : i32
    %30 = arith.addi %11, %c6_i32 : i32
    %31 = arith.index_cast %30 : i32 to index
    %32 = memref.load %arg2[%31] : memref<54xf32, #tpu.memory_space<smem>>
    %c7_i32 = arith.constant 7 : i32
    %33 = arith.addi %11, %c7_i32 : i32
    %34 = arith.index_cast %33 : i32 to index
    %35 = memref.load %arg2[%34] : memref<54xf32, #tpu.memory_space<smem>>
    %c8_i32 = arith.constant 8 : i32
    %36 = arith.addi %11, %c8_i32 : i32
    %37 = arith.index_cast %36 : i32 to index
    %38 = memref.load %arg2[%37] : memref<54xf32, #tpu.memory_space<smem>>
    %c0_i32_10 = arith.constant 0 : i32
    %39 = arith.addi %11, %c0_i32_10 : i32
    %40 = arith.index_cast %39 : i32 to index
    %41 = memref.load %arg3[%40] : memref<54xf32, #tpu.memory_space<smem>>
    %c1_i32_11 = arith.constant 1 : i32
    %42 = arith.addi %11, %c1_i32_11 : i32
    %43 = arith.index_cast %42 : i32 to index
    %44 = memref.load %arg3[%43] : memref<54xf32, #tpu.memory_space<smem>>
    %c2_i32_12 = arith.constant 2 : i32
    %45 = arith.addi %11, %c2_i32_12 : i32
    %46 = arith.index_cast %45 : i32 to index
    %47 = memref.load %arg3[%46] : memref<54xf32, #tpu.memory_space<smem>>
    %c3_i32_13 = arith.constant 3 : i32
    %48 = arith.addi %11, %c3_i32_13 : i32
    %49 = arith.index_cast %48 : i32 to index
    %50 = memref.load %arg3[%49] : memref<54xf32, #tpu.memory_space<smem>>
    %c4_i32_14 = arith.constant 4 : i32
    %51 = arith.addi %11, %c4_i32_14 : i32
    %52 = arith.index_cast %51 : i32 to index
    %53 = memref.load %arg3[%52] : memref<54xf32, #tpu.memory_space<smem>>
    %c5_i32_15 = arith.constant 5 : i32
    %54 = arith.addi %11, %c5_i32_15 : i32
    %55 = arith.index_cast %54 : i32 to index
    %56 = memref.load %arg3[%55] : memref<54xf32, #tpu.memory_space<smem>>
    %c6_i32_16 = arith.constant 6 : i32
    %57 = arith.addi %11, %c6_i32_16 : i32
    %58 = arith.index_cast %57 : i32 to index
    %59 = memref.load %arg3[%58] : memref<54xf32, #tpu.memory_space<smem>>
    %c7_i32_17 = arith.constant 7 : i32
    %60 = arith.addi %11, %c7_i32_17 : i32
    %61 = arith.index_cast %60 : i32 to index
    %62 = memref.load %arg3[%61] : memref<54xf32, #tpu.memory_space<smem>>
    %c8_i32_18 = arith.constant 8 : i32
    %63 = arith.addi %11, %c8_i32_18 : i32
    %64 = arith.index_cast %63 : i32 to index
    %65 = memref.load %arg3[%64] : memref<54xf32, #tpu.memory_space<smem>>
    %66 = arith.index_cast %10 : i32 to index
    %c0_19 = arith.constant 0 : index
    %c0_20 = arith.constant 0 : index
    %67 = vector.load %arg5[%66, %c0_19, %c0_20] : memref<5x8x128xf32, #tpu.memory_space<vmem>>, vector<1x8x128xf32>
    %68 = vector.shape_cast %67 : vector<1x8x128xf32> to vector<8x128xf32>
    %69 = vector.extract_strided_slice %68 {offsets = [0, 0], sizes = [1, 128], strides = [1, 1]} : vector<8x128xf32> to vector<1x128xf32>
    %70 = vector.extract_strided_slice %68 {offsets = [1, 0], sizes = [1, 128], strides = [1, 1]} : vector<8x128xf32> to vector<1x128xf32>
    %71 = vector.extract_strided_slice %68 {offsets = [2, 0], sizes = [1, 128], strides = [1, 1]} : vector<8x128xf32> to vector<1x128xf32>
    %72 = vector.broadcast %14 : f32 to vector<1x128xf32>
    %73 = arith.mulf %72, %69 : vector<1x128xf32>
    %74 = vector.broadcast %17 : f32 to vector<1x128xf32>
    %75 = arith.mulf %74, %70 : vector<1x128xf32>
    %76 = arith.addf %73, %75 : vector<1x128xf32>
    %77 = vector.broadcast %20 : f32 to vector<1x128xf32>
    %78 = arith.mulf %77, %71 : vector<1x128xf32>
    %79 = arith.addf %76, %78 : vector<1x128xf32>
    %80 = vector.broadcast %23 : f32 to vector<1x128xf32>
    %81 = arith.mulf %80, %69 : vector<1x128xf32>
    %82 = vector.broadcast %26 : f32 to vector<1x128xf32>
    %83 = arith.mulf %82, %70 : vector<1x128xf32>
    %84 = arith.addf %81, %83 : vector<1x128xf32>
    %85 = vector.broadcast %29 : f32 to vector<1x128xf32>
    %86 = arith.mulf %85, %71 : vector<1x128xf32>
    %87 = arith.addf %84, %86 : vector<1x128xf32>
    %88 = vector.broadcast %32 : f32 to vector<1x128xf32>
    %89 = arith.mulf %88, %69 : vector<1x128xf32>
    %90 = vector.broadcast %35 : f32 to vector<1x128xf32>
    %91 = arith.mulf %90, %70 : vector<1x128xf32>
    %92 = arith.addf %89, %91 : vector<1x128xf32>
    %93 = vector.broadcast %38 : f32 to vector<1x128xf32>
    %94 = arith.mulf %93, %71 : vector<1x128xf32>
    %95 = arith.addf %92, %94 : vector<1x128xf32>
    %96 = vector.broadcast %41 : f32 to vector<1x128xf32>
    %97 = arith.mulf %96, %69 : vector<1x128xf32>
    %98 = vector.broadcast %44 : f32 to vector<1x128xf32>
    %99 = arith.mulf %98, %70 : vector<1x128xf32>
    %100 = arith.addf %97, %99 : vector<1x128xf32>
    %101 = vector.broadcast %47 : f32 to vector<1x128xf32>
    %102 = arith.mulf %101, %71 : vector<1x128xf32>
    %103 = arith.addf %100, %102 : vector<1x128xf32>
    %104 = vector.broadcast %50 : f32 to vector<1x128xf32>
    %105 = arith.mulf %104, %69 : vector<1x128xf32>
    %106 = vector.broadcast %53 : f32 to vector<1x128xf32>
    %107 = arith.mulf %106, %70 : vector<1x128xf32>
    %108 = arith.addf %105, %107 : vector<1x128xf32>
    %109 = vector.broadcast %56 : f32 to vector<1x128xf32>
    %110 = arith.mulf %109, %71 : vector<1x128xf32>
    %111 = arith.addf %108, %110 : vector<1x128xf32>
    %112 = vector.broadcast %59 : f32 to vector<1x128xf32>
    %113 = arith.mulf %112, %69 : vector<1x128xf32>
    %114 = vector.broadcast %62 : f32 to vector<1x128xf32>
    %115 = arith.mulf %114, %70 : vector<1x128xf32>
    %116 = arith.addf %113, %115 : vector<1x128xf32>
    %117 = vector.broadcast %65 : f32 to vector<1x128xf32>
    %118 = arith.mulf %117, %71 : vector<1x128xf32>
    %119 = arith.addf %116, %118 : vector<1x128xf32>
    %120 = arith.index_cast %8 : i32 to index
    %121 = memref.load %arg4[%120] : memref<6xi32, #tpu.memory_space<smem>>
    %c0_i32_21 = arith.constant 0 : i32
    %122 = arith.cmpi eq, %121, %c0_i32_21 : i32
    %123 = arith.extui %122 : i1 to i32
    %c0_i32_22 = arith.constant 0 : i32
    %124 = arith.cmpi ne, %123, %c0_i32_22 : i32
    scf.if %124 {
      %259 = arith.subf %79, %103 : vector<1x128xf32>
      %260 = arith.mulf %259, %259 : vector<1x128xf32>
      %261 = arith.subf %87, %111 : vector<1x128xf32>
      %262 = arith.mulf %261, %261 : vector<1x128xf32>
      %263 = arith.addf %260, %262 : vector<1x128xf32>
      %264 = arith.subf %95, %119 : vector<1x128xf32>
      %265 = arith.mulf %264, %264 : vector<1x128xf32>
      %266 = arith.addf %263, %265 : vector<1x128xf32>
      %cst_60 = arith.constant 5.000000e-01 : f32
      %267 = vector.broadcast %cst_60 : f32 to vector<1x128xf32>
      %268 = arith.mulf %267, %266 : vector<1x128xf32>
      %cst_61 = arith.constant 0.00999999977 : f32
      %269 = vector.broadcast %cst_61 : f32 to vector<1x128xf32>
      %270 = arith.subf %268, %269 : vector<1x128xf32>
      %cst_62 = arith.constant 0.000000e+00 : f32
      %271 = vector.broadcast %cst_62 : f32 to vector<1x128xf32>
      %272 = arith.maximumf %270, %271 : vector<1x128xf32>
      %c0_63 = arith.constant 0 : index
      %c0_64 = arith.constant 0 : index
      %c0_65 = arith.constant 0 : index
      %273 = vector.load %arg6[%c0_63, %c0_64, %c0_65] : memref<1x1x128xf32, #tpu.memory_space<vmem>>, vector<1x1x128xf32>
      %274 = vector.shape_cast %272 : vector<1x128xf32> to vector<1x1x128xf32>
      %275 = arith.addf %273, %274 : vector<1x1x128xf32>
      %c0_66 = arith.constant 0 : index
      %c0_67 = arith.constant 0 : index
      %c0_68 = arith.constant 0 : index
      %276 = vector.load %arg6[%c0_66, %c0_67, %c0_68] : memref<1x1x128xf32, #tpu.memory_space<vmem>>, vector<1x1x128xf32>
      tpu.vector_store %arg6[%c0_66, %c0_67, %c0_68], %275 {strides = array<i32>} : memref<1x1x128xf32, #tpu.memory_space<vmem>>, vector<1x1x128xf32>,
    } else {
    }
    %c0_i32_23 = arith.constant 0 : i32
    %125 = arith.cmpi ne, %121, %c0_i32_23 : i32
    %126 = arith.extui %125 : i1 to i32
    %c0_i32_24 = arith.constant 0 : i32
    %127 = arith.cmpi ne, %126, %c0_i32_24 : i32
    scf.if %127 {
      %259 = arith.mulf %69, %69 : vector<1x128xf32>
      %260 = arith.mulf %70, %70 : vector<1x128xf32>
      %261 = arith.addf %259, %260 : vector<1x128xf32>
      %262 = arith.mulf %71, %71 : vector<1x128xf32>
      %263 = arith.addf %261, %262 : vector<1x128xf32>
      %cst_60 = arith.constant 2.000000e+00 : f32
      %264 = vector.broadcast %cst_60 : f32 to vector<1x128xf32>
      %265 = arith.mulf %264, %103 : vector<1x128xf32>
      %c0_61 = arith.constant 0 : index
      %c0_62 = arith.constant 0 : index
      %266 = vector.load %arg7[%c0_61, %c0_62] : memref<8x128xf32, #tpu.memory_space<vmem>>, vector<1x128xf32>
      tpu.vector_store %arg7[%c0_61, %c0_62], %265 {strides = array<i32>} : memref<8x128xf32, #tpu.memory_space<vmem>>, vector<1x128xf32>,
      %cst_63 = arith.constant 2.000000e+00 : f32
      %267 = vector.broadcast %cst_63 : f32 to vector<1x128xf32>
      %268 = arith.mulf %267, %111 : vector<1x128xf32>
      %c1 = arith.constant 1 : index
      %c0_64 = arith.constant 0 : index
      %269 = vector.load %arg7[%c1, %c0_64] : memref<8x128xf32, #tpu.memory_space<vmem>>, vector<1x128xf32>
      tpu.vector_store %arg7[%c1, %c0_64], %268 {strides = array<i32>} : memref<8x128xf32, #tpu.memory_space<vmem>>, vector<1x128xf32>,
      %cst_65 = arith.constant 2.000000e+00 : f32
      %270 = vector.broadcast %cst_65 : f32 to vector<1x128xf32>
      %271 = arith.mulf %270, %119 : vector<1x128xf32>
      %c2 = arith.constant 2 : index
      %c0_66 = arith.constant 0 : index
      %272 = vector.load %arg7[%c2, %c0_66] : memref<8x128xf32, #tpu.memory_space<vmem>>, vector<1x128xf32>
      tpu.vector_store %arg7[%c2, %c0_66], %271 {strides = array<i32>} : memref<8x128xf32, #tpu.memory_space<vmem>>, vector<1x128xf32>,
      %c3_67 = arith.constant 3 : index
      %c0_68 = arith.constant 0 : index
      %273 = vector.load %arg7[%c3_67, %c0_68] : memref<8x128xf32, #tpu.memory_space<vmem>>, vector<1x128xf32>
      tpu.vector_store %arg7[%c3_67, %c0_68], %263 {strides = array<i32>} : memref<8x128xf32, #tpu.memory_space<vmem>>, vector<1x128xf32>,
      %c0_69 = arith.constant 0 : index
      %c0_70 = arith.constant 0 : index
      %274 = vector.load %arg8[%c0_69, %c0_70] : memref<8x128xf32, #tpu.memory_space<vmem>>, vector<1x128xf32>
      tpu.vector_store %arg8[%c0_69, %c0_70], %79 {strides = array<i32>} : memref<8x128xf32, #tpu.memory_space<vmem>>, vector<1x128xf32>,
      %c1_71 = arith.constant 1 : index
      %c0_72 = arith.constant 0 : index
      %275 = vector.load %arg8[%c1_71, %c0_72] : memref<8x128xf32, #tpu.memory_space<vmem>>, vector<1x128xf32>
      tpu.vector_store %arg8[%c1_71, %c0_72], %87 {strides = array<i32>} : memref<8x128xf32, #tpu.memory_space<vmem>>, vector<1x128xf32>,
      %c2_73 = arith.constant 2 : index
      %c0_74 = arith.constant 0 : index
      %276 = vector.load %arg8[%c2_73, %c0_74] : memref<8x128xf32, #tpu.memory_space<vmem>>, vector<1x128xf32>
      tpu.vector_store %arg8[%c2_73, %c0_74], %95 {strides = array<i32>} : memref<8x128xf32, #tpu.memory_space<vmem>>, vector<1x128xf32>,
      %c0_75 = arith.constant 0 : index
      %c0_76 = arith.constant 0 : index
      %277 = vector.load %arg7[%c0_75, %c0_76] : memref<8x128xf32, #tpu.memory_space<vmem>>, vector<8x128xf32>
      %c0_77 = arith.constant 0 : index
      %c0_78 = arith.constant 0 : index
      %278 = vector.load %arg8[%c0_77, %c0_78] : memref<8x128xf32, #tpu.memory_space<vmem>>, vector<8x128xf32>
      %cst_79 = arith.constant dense<0.000000e+00> : vector<128x128xf32>
      %279 = tpu.matmul %277, %278, %cst_79 {dimension_numbers = #tpu.dot_dimension_numbers<[0], [0], [1], [1], [0, 1, 1, 1], [], []>} : vector<8x128xf32>, vector<8x128xf32>, vector<128x128xf32> -> vector<128x128xf32>
      %cst_80 = arith.constant dense<0xFF800000> : vector<128xf32>
      %280 = vector.multi_reduction <maximumf>, %279, %cst_80 [0] : vector<128x128xf32> to vector<128xf32>
      %281 = vector.shape_cast %280 : vector<128xf32> to vector<1x128xf32>
      %282 = arith.subf %263, %281 : vector<1x128xf32>
      %cst_81 = arith.constant 5.000000e-01 : f32
      %283 = vector.broadcast %cst_81 : f32 to vector<1x128xf32>
      %284 = arith.mulf %283, %282 : vector<1x128xf32>
      %cst_82 = arith.constant 0.00999999977 : f32
      %285 = vector.broadcast %cst_82 : f32 to vector<1x128xf32>
      %286 = arith.subf %284, %285 : vector<1x128xf32>
      %cst_83 = arith.constant 0.000000e+00 : f32
      %287 = vector.broadcast %cst_83 : f32 to vector<1x128xf32>
      %288 = arith.maximumf %286, %287 : vector<1x128xf32>
      %c0_84 = arith.constant 0 : index
      %c0_85 = arith.constant 0 : index
      %c0_86 = arith.constant 0 : index
      %289 = vector.load %arg6[%c0_84, %c0_85, %c0_86] : memref<1x1x128xf32, #tpu.memory_space<vmem>>, vector<1x1x128xf32>
      %290 = vector.shape_cast %288 : vector<1x128xf32> to vector<1x1x128xf32>
      %291 = arith.addf %289, %290 : vector<1x1x128xf32>
      %c0_87 = arith.constant 0 : index
      %c0_88 = arith.constant 0 : index
      %c0_89 = arith.constant 0 : index
      %292 = vector.load %arg6[%c0_87, %c0_88, %c0_89] : memref<1x1x128xf32, #tpu.memory_space<vmem>>, vector<1x1x128xf32>
      tpu.vector_store %arg6[%c0_87, %c0_88, %c0_89], %291 {strides = array<i32>} : memref<1x1x128xf32, #tpu.memory_space<vmem>>, vector<1x1x128xf32>,
    } else {
    }
    %c4_i32_25 = arith.constant 4 : i32
    %128 = arith.muli %arg0, %c4_i32_25 : i32
    %c1_i32_26 = arith.constant 1 : i32
    %129 = arith.addi %128, %c1_i32_26 : i32
    %130 = arith.index_cast %129 : i32 to index
    %131 = memref.load %arg1[%130] : memref<6xi32, #tpu.memory_space<smem>>
    %c9_i32_27 = arith.constant 9 : i32
    %132 = arith.muli %129, %c9_i32_27 : i32
    %c0_i32_28 = arith.constant 0 : i32
    %133 = arith.addi %132, %c0_i32_28 : i32
    %134 = arith.index_cast %133 : i32 to index
    %135 = memref.load %arg2[%134] : memref<54xf32, #tpu.memory_space<smem>>
    %c1_i32_29 = arith.constant 1 : i32
    %136 = arith.addi %132, %c1_i32_29 : i32
    %137 = arith.index_cast %136 : i32 to index
    %138 = memref.load %arg2[%137] : memref<54xf32, #tpu.memory_space<smem>>
    %c2_i32_30 = arith.constant 2 : i32
    %139 = arith.addi %132, %c2_i32_30 : i32
    %140 = arith.index_cast %139 : i32 to index
    %141 = memref.load %arg2[%140] : memref<54xf32, #tpu.memory_space<smem>>
    %c3_i32_31 = arith.constant 3 : i32
    %142 = arith.addi %132, %c3_i32_31 : i32
    %143 = arith.index_cast %142 : i32 to index
    %144 = memref.load %arg2[%143] : memref<54xf32, #tpu.memory_space<smem>>
    %c4_i32_32 = arith.constant 4 : i32
    %145 = arith.addi %132, %c4_i32_32 : i32
    %146 = arith.index_cast %145 : i32 to index
    %147 = memref.load %arg2[%146] : memref<54xf32, #tpu.memory_space<smem>>
    %c5_i32_33 = arith.constant 5 : i32
    %148 = arith.addi %132, %c5_i32_33 : i32
    %149 = arith.index_cast %148 : i32 to index
    %150 = memref.load %arg2[%149] : memref<54xf32, #tpu.memory_space<smem>>
    %c6_i32_34 = arith.constant 6 : i32
    %151 = arith.addi %132, %c6_i32_34 : i32
    %152 = arith.index_cast %151 : i32 to index
    %153 = memref.load %arg2[%152] : memref<54xf32, #tpu.memory_space<smem>>
    %c7_i32_35 = arith.constant 7 : i32
    %154 = arith.addi %132, %c7_i32_35 : i32
    %155 = arith.index_cast %154 : i32 to index
    %156 = memref.load %arg2[%155] : memref<54xf32, #tpu.memory_space<smem>>
    %c8_i32_36 = arith.constant 8 : i32
    %157 = arith.addi %132, %c8_i32_36 : i32
    %158 = arith.index_cast %157 : i32 to index
    %159 = memref.load %arg2[%158] : memref<54xf32, #tpu.memory_space<smem>>
    %c0_i32_37 = arith.constant 0 : i32
    %160 = arith.addi %132, %c0_i32_37 : i32
    %161 = arith.index_cast %160 : i32 to index
    %162 = memref.load %arg3[%161] : memref<54xf32, #tpu.memory_space<smem>>
    %c1_i32_38 = arith.constant 1 : i32
    %163 = arith.addi %132, %c1_i32_38 : i32
    %164 = arith.index_cast %163 : i32 to index
    %165 = memref.load %arg3[%164] : memref<54xf32, #tpu.memory_space<smem>>
    %c2_i32_39 = arith.constant 2 : i32
    %166 = arith.addi %132, %c2_i32_39 : i32
    %167 = arith.index_cast %166 : i32 to index
    %168 = memref.load %arg3[%167] : memref<54xf32, #tpu.memory_space<smem>>
    %c3_i32_40 = arith.constant 3 : i32
    %169 = arith.addi %132, %c3_i32_40 : i32
    %170 = arith.index_cast %169 : i32 to index
    %171 = memref.load %arg3[%170] : memref<54xf32, #tpu.memory_space<smem>>
    %c4_i32_41 = arith.constant 4 : i32
    %172 = arith.addi %132, %c4_i32_41 : i32
    %173 = arith.index_cast %172 : i32 to index
    %174 = memref.load %arg3[%173] : memref<54xf32, #tpu.memory_space<smem>>
    %c5_i32_42 = arith.constant 5 : i32
    %175 = arith.addi %132, %c5_i32_42 : i32
    %176 = arith.index_cast %175 : i32 to index
    %177 = memref.load %arg3[%176] : memref<54xf32, #tpu.memory_space<smem>>
    %c6_i32_43 = arith.constant 6 : i32
    %178 = arith.addi %132, %c6_i32_43 : i32
    %179 = arith.index_cast %178 : i32 to index
    %180 = memref.load %arg3[%179] : memref<54xf32, #tpu.memory_space<smem>>
    %c7_i32_44 = arith.constant 7 : i32
    %181 = arith.addi %132, %c7_i32_44 : i32
    %182 = arith.index_cast %181 : i32 to index
    %183 = memref.load %arg3[%182] : memref<54xf32, #tpu.memory_space<smem>>
    %c8_i32_45 = arith.constant 8 : i32
    %184 = arith.addi %132, %c8_i32_45 : i32
    %185 = arith.index_cast %184 : i32 to index
    %186 = memref.load %arg3[%185] : memref<54xf32, #tpu.memory_space<smem>>
    %187 = arith.index_cast %131 : i32 to index
    %c0_46 = arith.constant 0 : index
    %c0_47 = arith.constant 0 : index
    %188 = vector.load %arg5[%187, %c0_46, %c0_47] : memref<5x8x128xf32, #tpu.memory_space<vmem>>, vector<1x8x128xf32>
    %189 = vector.shape_cast %188 : vector<1x8x128xf32> to vector<8x128xf32>
    %190 = vector.extract_strided_slice %189 {offsets = [0, 0], sizes = [1, 128], strides = [1, 1]} : vector<8x128xf32> to vector<1x128xf32>
    %191 = vector.extract_strided_slice %189 {offsets = [1, 0], sizes = [1, 128], strides = [1, 1]} : vector<8x128xf32> to vector<1x128xf32>
    %192 = vector.extract_strided_slice %189 {offsets = [2, 0], sizes = [1, 128], strides = [1, 1]} : vector<8x128xf32> to vector<1x128xf32>
    %193 = vector.broadcast %135 : f32 to vector<1x128xf32>
    %194 = arith.mulf %193, %190 : vector<1x128xf32>
    %195 = vector.broadcast %138 : f32 to vector<1x128xf32>
    %196 = arith.mulf %195, %191 : vector<1x128xf32>
    %197 = arith.addf %194, %196 : vector<1x128xf32>
    %198 = vector.broadcast %141 : f32 to vector<1x128xf32>
    %199 = arith.mulf %198, %192 : vector<1x128xf32>
    %200 = arith.addf %197, %199 : vector<1x128xf32>
    %201 = vector.broadcast %144 : f32 to vector<1x128xf32>
    %202 = arith.mulf %201, %190 : vector<1x128xf32>
    %203 = vector.broadcast %147 : f32 to vector<1x128xf32>
    %204 = arith.mulf %203, %191 : vector<1x128xf32>
    %205 = arith.addf %202, %204 : vector<1x128xf32>
    %206 = vector.broadcast %150 : f32 to vector<1x128xf32>
    %207 = arith.mulf %206, %192 : vector<1x128xf32>
    %208 = arith.addf %205, %207 : vector<1x128xf32>
    %209 = vector.broadcast %153 : f32 to vector<1x128xf32>
    %210 = arith.mulf %209, %190 : vector<1x128xf32>
    %211 = vector.broadcast %156 : f32 to vector<1x128xf32>
    %212 = arith.mulf %211, %191 : vector<1x128xf32>
    %213 = arith.addf %210, %212 : vector<1x128xf32>
    %214 = vector.broadcast %159 : f32 to vector<1x128xf32>
    %215 = arith.mulf %214, %192 : vector<1x128xf32>
    %216 = arith.addf %213, %215 : vector<1x128xf32>
    %217 = vector.broadcast %162 : f32 to vector<1x128xf32>
    %218 = arith.mulf %217, %190 : vector<1x128xf32>
    %219 = vector.broadcast %165 : f32 to vector<1x128xf32>
    %220 = arith.mulf %219, %191 : vector<1x128xf32>
    %221 = arith.addf %218, %220 : vector<1x128xf32>
    %222 = vector.broadcast %168 : f32 to vector<1x128xf32>
    %223 = arith.mulf %222, %192 : vector<1x128xf32>
    %224 = arith.addf %221, %223 : vector<1x128xf32>
    %225 = vector.broadcast %171 : f32 to vector<1x128xf32>
    %226 = arith.mulf %225, %190 : vector<1x128xf32>
    %227 = vector.broadcast %174 : f32 to vector<1x128xf32>
    %228 = arith.mulf %227, %191 : vector<1x128xf32>
    %229 = arith.addf %226, %228 : vector<1x128xf32>
    %230 = vector.broadcast %177 : f32 to vector<1x128xf32>
    %231 = arith.mulf %230, %192 : vector<1x128xf32>
    %232 = arith.addf %229, %231 : vector<1x128xf32>
    %233 = vector.broadcast %180 : f32 to vector<1x128xf32>
    %234 = arith.mulf %233, %190 : vector<1x128xf32>
    %235 = vector.broadcast %183 : f32 to vector<1x128xf32>
    %236 = arith.mulf %235, %191 : vector<1x128xf32>
    %237 = arith.addf %234, %236 : vector<1x128xf32>
    %238 = vector.broadcast %186 : f32 to vector<1x128xf32>
    %239 = arith.mulf %238, %192 : vector<1x128xf32>
    %240 = arith.addf %237, %239 : vector<1x128xf32>
    %241 = arith.index_cast %129 : i32 to index
    %242 = memref.load %arg4[%241] : memref<6xi32, #tpu.memory_space<smem>>
    %c0_i32_48 = arith.constant 0 : i32
    %243 = arith.cmpi eq, %242, %c0_i32_48 : i32
    %244 = arith.extui %243 : i1 to i32
    %c0_i32_49 = arith.constant 0 : i32
    %245 = arith.cmpi ne, %244, %c0_i32_49 : i32
    scf.if %245 {
      %259 = arith.subf %200, %224 : vector<1x128xf32>
      %260 = arith.mulf %259, %259 : vector<1x128xf32>
      %261 = arith.subf %208, %232 : vector<1x128xf32>
      %262 = arith.mulf %261, %261 : vector<1x128xf32>
      %263 = arith.addf %260, %262 : vector<1x128xf32>
      %264 = arith.subf %216, %240 : vector<1x128xf32>
      %265 = arith.mulf %264, %264 : vector<1x128xf32>
      %266 = arith.addf %263, %265 : vector<1x128xf32>
      %cst_60 = arith.constant 5.000000e-01 : f32
      %267 = vector.broadcast %cst_60 : f32 to vector<1x128xf32>
      %268 = arith.mulf %267, %266 : vector<1x128xf32>
      %cst_61 = arith.constant 0.00999999977 : f32
      %269 = vector.broadcast %cst_61 : f32 to vector<1x128xf32>
      %270 = arith.subf %268, %269 : vector<1x128xf32>
      %cst_62 = arith.constant 0.000000e+00 : f32
      %271 = vector.broadcast %cst_62 : f32 to vector<1x128xf32>
      %272 = arith.maximumf %270, %271 : vector<1x128xf32>
      %c0_63 = arith.constant 0 : index
      %c0_64 = arith.constant 0 : index
      %c0_65 = arith.constant 0 : index
      %273 = vector.load %arg6[%c0_63, %c0_64, %c0_65] : memref<1x1x128xf32, #tpu.memory_space<vmem>>, vector<1x1x128xf32>
      %274 = vector.shape_cast %272 : vector<1x128xf32> to vector<1x1x128xf32>
      %275 = arith.addf %273, %274 : vector<1x1x128xf32>
      %c0_66 = arith.constant 0 : index
      %c0_67 = arith.constant 0 : index
      %c0_68 = arith.constant 0 : index
      %276 = vector.load %arg6[%c0_66, %c0_67, %c0_68] : memref<1x1x128xf32, #tpu.memory_space<vmem>>, vector<1x1x128xf32>
      tpu.vector_store %arg6[%c0_66, %c0_67, %c0_68], %275 {strides = array<i32>} : memref<1x1x128xf32, #tpu.memory_space<vmem>>, vector<1x1x128xf32>,
    } else {
    }
    %c0_i32_50 = arith.constant 0 : i32
    %246 = arith.cmpi ne, %242, %c0_i32_50 : i32
    %247 = arith.extui %246 : i1 to i32
    %c0_i32_51 = arith.constant 0 : i32
    %248 = arith.cmpi ne, %247, %c0_i32_51 : i32
    scf.if %248 {
      %259 = arith.mulf %190, %190 : vector<1x128xf32>
      %260 = arith.mulf %191, %191 : vector<1x128xf32>
      %261 = arith.addf %259, %260 : vector<1x128xf32>
      %262 = arith.mulf %192, %192 : vector<1x128xf32>
      %263 = arith.addf %261, %262 : vector<1x128xf32>
      %cst_60 = arith.constant 2.000000e+00 : f32
      %264 = vector.broadcast %cst_60 : f32 to vector<1x128xf32>
      %265 = arith.mulf %264, %224 : vector<1x128xf32>
      %c0_61 = arith.constant 0 : index
      %c0_62 = arith.constant 0 : index
      %266 = vector.load %arg7[%c0_61, %c0_62] : memref<8x128xf32, #tpu.memory_space<vmem>>, vector<1x128xf32>
      tpu.vector_store %arg7[%c0_61, %c0_62], %265 {strides = array<i32>} : memref<8x128xf32, #tpu.memory_space<vmem>>, vector<1x128xf32>,
      %cst_63 = arith.constant 2.000000e+00 : f32
      %267 = vector.broadcast %cst_63 : f32 to vector<1x128xf32>
      %268 = arith.mulf %267, %232 : vector<1x128xf32>
      %c1 = arith.constant 1 : index
      %c0_64 = arith.constant 0 : index
      %269 = vector.load %arg7[%c1, %c0_64] : memref<8x128xf32, #tpu.memory_space<vmem>>, vector<1x128xf32>
      tpu.vector_store %arg7[%c1, %c0_64], %268 {strides = array<i32>} : memref<8x128xf32, #tpu.memory_space<vmem>>, vector<1x128xf32>,
      %cst_65 = arith.constant 2.000000e+00 : f32
      %270 = vector.broadcast %cst_65 : f32 to vector<1x128xf32>
      %271 = arith.mulf %270, %240 : vector<1x128xf32>
      %c2 = arith.constant 2 : index
      %c0_66 = arith.constant 0 : index
      %272 = vector.load %arg7[%c2, %c0_66] : memref<8x128xf32, #tpu.memory_space<vmem>>, vector<1x128xf32>
      tpu.vector_store %arg7[%c2, %c0_66], %271 {strides = array<i32>} : memref<8x128xf32, #tpu.memory_space<vmem>>, vector<1x128xf32>,
      %c3_67 = arith.constant 3 : index
      %c0_68 = arith.constant 0 : index
      %273 = vector.load %arg7[%c3_67, %c0_68] : memref<8x128xf32, #tpu.memory_space<vmem>>, vector<1x128xf32>
      tpu.vector_store %arg7[%c3_67, %c0_68], %263 {strides = array<i32>} : memref<8x128xf32, #tpu.memory_space<vmem>>, vector<1x128xf32>,
      %c0_69 = arith.constant 0 : index
      %c0_70 = arith.constant 0 : index
      %274 = vector.load %arg8[%c0_69, %c0_70] : memref<8x128xf32, #tpu.memory_space<vmem>>, vector<1x128xf32>
      tpu.vector_store %arg8[%c0_69, %c0_70], %200 {strides = array<i32>} : memref<8x128xf32, #tpu.memory_space<vmem>>, vector<1x128xf32>,
      %c1_71 = arith.constant 1 : index
      %c0_72 = arith.constant 0 : index
      %275 = vector.load %arg8[%c1_71, %c0_72] : memref<8x128xf32, #tpu.memory_space<vmem>>, vector<1x128xf32>
      tpu.vector_store %arg8[%c1_71, %c0_72], %208 {strides = array<i32>} : memref<8x128xf32, #tpu.memory_space<vmem>>, vector<1x128xf32>,
      %c2_73 = arith.constant 2 : index
      %c0_74 = arith.constant 0 : index
      %276 = vector.load %arg8[%c2_73, %c0_74] : memref<8x128xf32, #tpu.memory_space<vmem>>, vector<1x128xf32>
      tpu.vector_store %arg8[%c2_73, %c0_74], %216 {strides = array<i32>} : memref<8x128xf32, #tpu.memory_space<vmem>>, vector<1x128xf32>,
      %c0_75 = arith.constant 0 : index
      %c0_76 = arith.constant 0 : index
      %277 = vector.load %arg7[%c0_75, %c0_76] : memref<8x128xf32, #tpu.memory_space<vmem>>, vector<8x128xf32>
      %c0_77 = arith.constant 0 : index
      %c0_78 = arith.constant 0 : index
      %278 = vector.load %arg8[%c0_77, %c0_78] : memref<8x128xf32, #tpu.memory_space<vmem>>, vector<8x128xf32>
      %cst_79 = arith.constant dense<0.000000e+00> : vector<128x128xf32>
      %279 = tpu.matmul %277, %278, %cst_79 {dimension_numbers = #tpu.dot_dimension_numbers<[0], [0], [1], [1], [0, 1, 1, 1], [], []>} : vector<8x128xf32>, vector<8x128xf32>, vector<128x128xf32> -> vector<128x128xf32>
      %cst_80 = arith.constant dense<0xFF800000> : vector<128xf32>
      %280 = vector.multi_reduction <maximumf>, %279, %cst_80 [0] : vector<128x128xf32> to vector<128xf32>
      %281 = vector.shape_cast %280 : vector<128xf32> to vector<1x128xf32>
      %282 = arith.subf %263, %281 : vector<1x128xf32>
      %cst_81 = arith.constant 5.000000e-01 : f32
      %283 = vector.broadcast %cst_81 : f32 to vector<1x128xf32>
      %284 = arith.mulf %283, %282 : vector<1x128xf32>
      %cst_82 = arith.constant 0.00999999977 : f32
      %285 = vector.broadcast %cst_82 : f32 to vector<1x128xf32>
      %286 = arith.subf %284, %285 : vector<1x128xf32>
      %cst_83 = arith.constant 0.000000e+00 : f32
      %287 = vector.broadcast %cst_83 : f32 to vector<1x128xf32>
      %288 = arith.maximumf %286, %287 : vector<1x128xf32>
      %c0_84 = arith.constant 0 : index
      %c0_85 = arith.constant 0 : index
      %c0_86 = arith.constant 0 : index
      %289 = vector.load %arg6[%c0_84, %c0_85, %c0_86] : memref<1x1x128xf32, #tpu.memory_space<vmem>>, vector<1x1x128xf32>
      %290 = vector.shape_cast %288 : vector<1x128xf32> to vector<1x1x128xf32>
      %291 = arith.addf %289, %290 : vector<1x1x128xf32>
      %c0_87 = arith.constant 0 : index
      %c0_88 = arith.constant 0 : index
      %c0_89 = arith.constant 0 : index
      %292 = vector.load %arg6[%c0_87, %c0_88, %c0_89] : memref<1x1x128xf32, #tpu.memory_space<vmem>>, vector<1x1x128xf32>
      tpu.vector_store %arg6[%c0_87, %c0_88, %c0_89], %291 {strides = array<i32>} : memref<1x1x128xf32, #tpu.memory_space<vmem>>, vector<1x1x128xf32>,
    } else {
    }
    %c4_i32_52 = arith.constant 4 : i32
    %249 = arith.muli %arg0, %c4_i32_52 : i32
    %c2_i32_53 = arith.constant 2 : i32
    %250 = arith.addi %249, %c2_i32_53 : i32
    %c6_i32_54 = arith.constant 6 : i32
    %251 = arith.cmpi slt, %250, %c6_i32_54 : i32
    %252 = arith.extui %251 : i1 to i32
    %c0_i32_55 = arith.constant 0 : i32
    %253 = arith.cmpi ne, %252, %c0_i32_55 : i32
    scf.if %253 {
      %259 = arith.index_cast %250 : i32 to index
      %260 = memref.load %arg1[%259] : memref<6xi32, #tpu.memory_space<smem>>
      %c9_i32_60 = arith.constant 9 : i32
      %261 = arith.muli %250, %c9_i32_60 : i32
      %c0_i32_61 = arith.constant 0 : i32
      %262 = arith.addi %261, %c0_i32_61 : i32
      %263 = arith.index_cast %262 : i32 to index
      %264 = memref.load %arg2[%263] : memref<54xf32, #tpu.memory_space<smem>>
      %c1_i32_62 = arith.constant 1 : i32
      %265 = arith.addi %261, %c1_i32_62 : i32
      %266 = arith.index_cast %265 : i32 to index
      %267 = memref.load %arg2[%266] : memref<54xf32, #tpu.memory_space<smem>>
      %c2_i32_63 = arith.constant 2 : i32
      %268 = arith.addi %261, %c2_i32_63 : i32
      %269 = arith.index_cast %268 : i32 to index
      %270 = memref.load %arg2[%269] : memref<54xf32, #tpu.memory_space<smem>>
      %c3_i32_64 = arith.constant 3 : i32
      %271 = arith.addi %261, %c3_i32_64 : i32
      %272 = arith.index_cast %271 : i32 to index
      %273 = memref.load %arg2[%272] : memref<54xf32, #tpu.memory_space<smem>>
      %c4_i32_65 = arith.constant 4 : i32
      %274 = arith.addi %261, %c4_i32_65 : i32
      %275 = arith.index_cast %274 : i32 to index
      %276 = memref.load %arg2[%275] : memref<54xf32, #tpu.memory_space<smem>>
      %c5_i32_66 = arith.constant 5 : i32
      %277 = arith.addi %261, %c5_i32_66 : i32
      %278 = arith.index_cast %277 : i32 to index
      %279 = memref.load %arg2[%278] : memref<54xf32, #tpu.memory_space<smem>>
      %c6_i32_67 = arith.constant 6 : i32
      %280 = arith.addi %261, %c6_i32_67 : i32
      %281 = arith.index_cast %280 : i32 to index
      %282 = memref.load %arg2[%281] : memref<54xf32, #tpu.memory_space<smem>>
      %c7_i32_68 = arith.constant 7 : i32
      %283 = arith.addi %261, %c7_i32_68 : i32
      %284 = arith.index_cast %283 : i32 to index
      %285 = memref.load %arg2[%284] : memref<54xf32, #tpu.memory_space<smem>>
      %c8_i32_69 = arith.constant 8 : i32
      %286 = arith.addi %261, %c8_i32_69 : i32
      %287 = arith.index_cast %286 : i32 to index
      %288 = memref.load %arg2[%287] : memref<54xf32, #tpu.memory_space<smem>>
      %c0_i32_70 = arith.constant 0 : i32
      %289 = arith.addi %261, %c0_i32_70 : i32
      %290 = arith.index_cast %289 : i32 to index
      %291 = memref.load %arg3[%290] : memref<54xf32, #tpu.memory_space<smem>>
      %c1_i32_71 = arith.constant 1 : i32
      %292 = arith.addi %261, %c1_i32_71 : i32
      %293 = arith.index_cast %292 : i32 to index
      %294 = memref.load %arg3[%293] : memref<54xf32, #tpu.memory_space<smem>>
      %c2_i32_72 = arith.constant 2 : i32
      %295 = arith.addi %261, %c2_i32_72 : i32
      %296 = arith.index_cast %295 : i32 to index
      %297 = memref.load %arg3[%296] : memref<54xf32, #tpu.memory_space<smem>>
      %c3_i32_73 = arith.constant 3 : i32
      %298 = arith.addi %261, %c3_i32_73 : i32
      %299 = arith.index_cast %298 : i32 to index
      %300 = memref.load %arg3[%299] : memref<54xf32, #tpu.memory_space<smem>>
      %c4_i32_74 = arith.constant 4 : i32
      %301 = arith.addi %261, %c4_i32_74 : i32
      %302 = arith.index_cast %301 : i32 to index
      %303 = memref.load %arg3[%302] : memref<54xf32, #tpu.memory_space<smem>>
      %c5_i32_75 = arith.constant 5 : i32
      %304 = arith.addi %261, %c5_i32_75 : i32
      %305 = arith.index_cast %304 : i32 to index
      %306 = memref.load %arg3[%305] : memref<54xf32, #tpu.memory_space<smem>>
      %c6_i32_76 = arith.constant 6 : i32
      %307 = arith.addi %261, %c6_i32_76 : i32
      %308 = arith.index_cast %307 : i32 to index
      %309 = memref.load %arg3[%308] : memref<54xf32, #tpu.memory_space<smem>>
      %c7_i32_77 = arith.constant 7 : i32
      %310 = arith.addi %261, %c7_i32_77 : i32
      %311 = arith.index_cast %310 : i32 to index
      %312 = memref.load %arg3[%311] : memref<54xf32, #tpu.memory_space<smem>>
      %c8_i32_78 = arith.constant 8 : i32
      %313 = arith.addi %261, %c8_i32_78 : i32
      %314 = arith.index_cast %313 : i32 to index
      %315 = memref.load %arg3[%314] : memref<54xf32, #tpu.memory_space<smem>>
      %316 = arith.index_cast %260 : i32 to index
      %c0_79 = arith.constant 0 : index
      %c0_80 = arith.constant 0 : index
      %317 = vector.load %arg5[%316, %c0_79, %c0_80] : memref<5x8x128xf32, #tpu.memory_space<vmem>>, vector<1x8x128xf32>
      %318 = vector.shape_cast %317 : vector<1x8x128xf32> to vector<8x128xf32>
      %319 = vector.extract_strided_slice %318 {offsets = [0, 0], sizes = [1, 128], strides = [1, 1]} : vector<8x128xf32> to vector<1x128xf32>
      %320 = vector.extract_strided_slice %318 {offsets = [1, 0], sizes = [1, 128], strides = [1, 1]} : vector<8x128xf32> to vector<1x128xf32>
      %321 = vector.extract_strided_slice %318 {offsets = [2, 0], sizes = [1, 128], strides = [1, 1]} : vector<8x128xf32> to vector<1x128xf32>
      %322 = vector.broadcast %264 : f32 to vector<1x128xf32>
      %323 = arith.mulf %322, %319 : vector<1x128xf32>
      %324 = vector.broadcast %267 : f32 to vector<1x128xf32>
      %325 = arith.mulf %324, %320 : vector<1x128xf32>
      %326 = arith.addf %323, %325 : vector<1x128xf32>
      %327 = vector.broadcast %270 : f32 to vector<1x128xf32>
      %328 = arith.mulf %327, %321 : vector<1x128xf32>
      %329 = arith.addf %326, %328 : vector<1x128xf32>
      %330 = vector.broadcast %273 : f32 to vector<1x128xf32>
      %331 = arith.mulf %330, %319 : vector<1x128xf32>
      %332 = vector.broadcast %276 : f32 to vector<1x128xf32>
      %333 = arith.mulf %332, %320 : vector<1x128xf32>
      %334 = arith.addf %331, %333 : vector<1x128xf32>
      %335 = vector.broadcast %279 : f32 to vector<1x128xf32>
      %336 = arith.mulf %335, %321 : vector<1x128xf32>
      %337 = arith.addf %334, %336 : vector<1x128xf32>
      %338 = vector.broadcast %282 : f32 to vector<1x128xf32>
      %339 = arith.mulf %338, %319 : vector<1x128xf32>
      %340 = vector.broadcast %285 : f32 to vector<1x128xf32>
      %341 = arith.mulf %340, %320 : vector<1x128xf32>
      %342 = arith.addf %339, %341 : vector<1x128xf32>
      %343 = vector.broadcast %288 : f32 to vector<1x128xf32>
      %344 = arith.mulf %343, %321 : vector<1x128xf32>
      %345 = arith.addf %342, %344 : vector<1x128xf32>
      %346 = vector.broadcast %291 : f32 to vector<1x128xf32>
      %347 = arith.mulf %346, %319 : vector<1x128xf32>
      %348 = vector.broadcast %294 : f32 to vector<1x128xf32>
      %349 = arith.mulf %348, %320 : vector<1x128xf32>
      %350 = arith.addf %347, %349 : vector<1x128xf32>
      %351 = vector.broadcast %297 : f32 to vector<1x128xf32>
      %352 = arith.mulf %351, %321 : vector<1x128xf32>
      %353 = arith.addf %350, %352 : vector<1x128xf32>
      %354 = vector.broadcast %300 : f32 to vector<1x128xf32>
      %355 = arith.mulf %354, %319 : vector<1x128xf32>
      %356 = vector.broadcast %303 : f32 to vector<1x128xf32>
      %357 = arith.mulf %356, %320 : vector<1x128xf32>
      %358 = arith.addf %355, %357 : vector<1x128xf32>
      %359 = vector.broadcast %306 : f32 to vector<1x128xf32>
      %360 = arith.mulf %359, %321 : vector<1x128xf32>
      %361 = arith.addf %358, %360 : vector<1x128xf32>
      %362 = vector.broadcast %309 : f32 to vector<1x128xf32>
      %363 = arith.mulf %362, %319 : vector<1x128xf32>
      %364 = vector.broadcast %312 : f32 to vector<1x128xf32>
      %365 = arith.mulf %364, %320 : vector<1x128xf32>
      %366 = arith.addf %363, %365 : vector<1x128xf32>
      %367 = vector.broadcast %315 : f32 to vector<1x128xf32>
      %368 = arith.mulf %367, %321 : vector<1x128xf32>
      %369 = arith.addf %366, %368 : vector<1x128xf32>
      %370 = arith.index_cast %250 : i32 to index
      %371 = memref.load %arg4[%370] : memref<6xi32, #tpu.memory_space<smem>>
      %c0_i32_81 = arith.constant 0 : i32
      %372 = arith.cmpi eq, %371, %c0_i32_81 : i32
      %373 = arith.extui %372 : i1 to i32
      %c0_i32_82 = arith.constant 0 : i32
      %374 = arith.cmpi ne, %373, %c0_i32_82 : i32
      scf.if %374 {
        %378 = arith.subf %329, %353 : vector<1x128xf32>
        %379 = arith.mulf %378, %378 : vector<1x128xf32>
        %380 = arith.subf %337, %361 : vector<1x128xf32>
        %381 = arith.mulf %380, %380 : vector<1x128xf32>
        %382 = arith.addf %379, %381 : vector<1x128xf32>
        %383 = arith.subf %345, %369 : vector<1x128xf32>
        %384 = arith.mulf %383, %383 : vector<1x128xf32>
        %385 = arith.addf %382, %384 : vector<1x128xf32>
        %cst_85 = arith.constant 5.000000e-01 : f32
        %386 = vector.broadcast %cst_85 : f32 to vector<1x128xf32>
        %387 = arith.mulf %386, %385 : vector<1x128xf32>
        %cst_86 = arith.constant 0.00999999977 : f32
        %388 = vector.broadcast %cst_86 : f32 to vector<1x128xf32>
        %389 = arith.subf %387, %388 : vector<1x128xf32>
        %cst_87 = arith.constant 0.000000e+00 : f32
        %390 = vector.broadcast %cst_87 : f32 to vector<1x128xf32>
        %391 = arith.maximumf %389, %390 : vector<1x128xf32>
        %c0_88 = arith.constant 0 : index
        %c0_89 = arith.constant 0 : index
        %c0_90 = arith.constant 0 : index
        %392 = vector.load %arg6[%c0_88, %c0_89, %c0_90] : memref<1x1x128xf32, #tpu.memory_space<vmem>>, vector<1x1x128xf32>
        %393 = vector.shape_cast %391 : vector<1x128xf32> to vector<1x1x128xf32>
        %394 = arith.addf %392, %393 : vector<1x1x128xf32>
        %c0_91 = arith.constant 0 : index
        %c0_92 = arith.constant 0 : index
        %c0_93 = arith.constant 0 : index
        %395 = vector.load %arg6[%c0_91, %c0_92, %c0_93] : memref<1x1x128xf32, #tpu.memory_space<vmem>>, vector<1x1x128xf32>
        tpu.vector_store %arg6[%c0_91, %c0_92, %c0_93], %394 {strides = array<i32>} : memref<1x1x128xf32, #tpu.memory_space<vmem>>, vector<1x1x128xf32>,
      } else {
      }
      %c0_i32_83 = arith.constant 0 : i32
      %375 = arith.cmpi ne, %371, %c0_i32_83 : i32
      %376 = arith.extui %375 : i1 to i32
      %c0_i32_84 = arith.constant 0 : i32
      %377 = arith.cmpi ne, %376, %c0_i32_84 : i32
      scf.if %377 {
        %378 = arith.mulf %319, %319 : vector<1x128xf32>
        %379 = arith.mulf %320, %320 : vector<1x128xf32>
        %380 = arith.addf %378, %379 : vector<1x128xf32>
        %381 = arith.mulf %321, %321 : vector<1x128xf32>
        %382 = arith.addf %380, %381 : vector<1x128xf32>
        %cst_85 = arith.constant 2.000000e+00 : f32
        %383 = vector.broadcast %cst_85 : f32 to vector<1x128xf32>
        %384 = arith.mulf %383, %353 : vector<1x128xf32>
        %c0_86 = arith.constant 0 : index
        %c0_87 = arith.constant 0 : index
        %385 = vector.load %arg7[%c0_86, %c0_87] : memref<8x128xf32, #tpu.memory_space<vmem>>, vector<1x128xf32>
        tpu.vector_store %arg7[%c0_86, %c0_87], %384 {strides = array<i32>} : memref<8x128xf32, #tpu.memory_space<vmem>>, vector<1x128xf32>,
        %cst_88 = arith.constant 2.000000e+00 : f32
        %386 = vector.broadcast %cst_88 : f32 to vector<1x128xf32>
        %387 = arith.mulf %386, %361 : vector<1x128xf32>
        %c1 = arith.constant 1 : index
        %c0_89 = arith.constant 0 : index
        %388 = vector.load %arg7[%c1, %c0_89] : memref<8x128xf32, #tpu.memory_space<vmem>>, vector<1x128xf32>
        tpu.vector_store %arg7[%c1, %c0_89], %387 {strides = array<i32>} : memref<8x128xf32, #tpu.memory_space<vmem>>, vector<1x128xf32>,
        %cst_90 = arith.constant 2.000000e+00 : f32
        %389 = vector.broadcast %cst_90 : f32 to vector<1x128xf32>
        %390 = arith.mulf %389, %369 : vector<1x128xf32>
        %c2 = arith.constant 2 : index
        %c0_91 = arith.constant 0 : index
        %391 = vector.load %arg7[%c2, %c0_91] : memref<8x128xf32, #tpu.memory_space<vmem>>, vector<1x128xf32>
        tpu.vector_store %arg7[%c2, %c0_91], %390 {strides = array<i32>} : memref<8x128xf32, #tpu.memory_space<vmem>>, vector<1x128xf32>,
        %c3_92 = arith.constant 3 : index
        %c0_93 = arith.constant 0 : index
        %392 = vector.load %arg7[%c3_92, %c0_93] : memref<8x128xf32, #tpu.memory_space<vmem>>, vector<1x128xf32>
        tpu.vector_store %arg7[%c3_92, %c0_93], %382 {strides = array<i32>} : memref<8x128xf32, #tpu.memory_space<vmem>>, vector<1x128xf32>,
        %c0_94 = arith.constant 0 : index
        %c0_95 = arith.constant 0 : index
        %393 = vector.load %arg8[%c0_94, %c0_95] : memref<8x128xf32, #tpu.memory_space<vmem>>, vector<1x128xf32>
        tpu.vector_store %arg8[%c0_94, %c0_95], %329 {strides = array<i32>} : memref<8x128xf32, #tpu.memory_space<vmem>>, vector<1x128xf32>,
        %c1_96 = arith.constant 1 : index
        %c0_97 = arith.constant 0 : index
        %394 = vector.load %arg8[%c1_96, %c0_97] : memref<8x128xf32, #tpu.memory_space<vmem>>, vector<1x128xf32>
        tpu.vector_store %arg8[%c1_96, %c0_97], %337 {strides = array<i32>} : memref<8x128xf32, #tpu.memory_space<vmem>>, vector<1x128xf32>,
        %c2_98 = arith.constant 2 : index
        %c0_99 = arith.constant 0 : index
        %395 = vector.load %arg8[%c2_98, %c0_99] : memref<8x128xf32, #tpu.memory_space<vmem>>, vector<1x128xf32>
        tpu.vector_store %arg8[%c2_98, %c0_99], %345 {strides = array<i32>} : memref<8x128xf32, #tpu.memory_space<vmem>>, vector<1x128xf32>,
        %c0_100 = arith.constant 0 : index
        %c0_101 = arith.constant 0 : index
        %396 = vector.load %arg7[%c0_100, %c0_101] : memref<8x128xf32, #tpu.memory_space<vmem>>, vector<8x128xf32>
        %c0_102 = arith.constant 0 : index
        %c0_103 = arith.constant 0 : index
        %397 = vector.load %arg8[%c0_102, %c0_103] : memref<8x128xf32, #tpu.memory_space<vmem>>, vector<8x128xf32>
        %cst_104 = arith.constant dense<0.000000e+00> : vector<128x128xf32>
        %398 = tpu.matmul %396, %397, %cst_104 {dimension_numbers = #tpu.dot_dimension_numbers<[0], [0], [1], [1], [0, 1, 1, 1], [], []>} : vector<8x128xf32>, vector<8x128xf32>, vector<128x128xf32> -> vector<128x128xf32>
        %cst_105 = arith.constant dense<0xFF800000> : vector<128xf32>
        %399 = vector.multi_reduction <maximumf>, %398, %cst_105 [0] : vector<128x128xf32> to vector<128xf32>
        %400 = vector.shape_cast %399 : vector<128xf32> to vector<1x128xf32>
        %401 = arith.subf %382, %400 : vector<1x128xf32>
        %cst_106 = arith.constant 5.000000e-01 : f32
        %402 = vector.broadcast %cst_106 : f32 to vector<1x128xf32>
        %403 = arith.mulf %402, %401 : vector<1x128xf32>
        %cst_107 = arith.constant 0.00999999977 : f32
        %404 = vector.broadcast %cst_107 : f32 to vector<1x128xf32>
        %405 = arith.subf %403, %404 : vector<1x128xf32>
        %cst_108 = arith.constant 0.000000e+00 : f32
        %406 = vector.broadcast %cst_108 : f32 to vector<1x128xf32>
        %407 = arith.maximumf %405, %406 : vector<1x128xf32>
        %c0_109 = arith.constant 0 : index
        %c0_110 = arith.constant 0 : index
        %c0_111 = arith.constant 0 : index
        %408 = vector.load %arg6[%c0_109, %c0_110, %c0_111] : memref<1x1x128xf32, #tpu.memory_space<vmem>>, vector<1x1x128xf32>
        %409 = vector.shape_cast %407 : vector<1x128xf32> to vector<1x1x128xf32>
        %410 = arith.addf %408, %409 : vector<1x1x128xf32>
        %c0_112 = arith.constant 0 : index
        %c0_113 = arith.constant 0 : index
        %c0_114 = arith.constant 0 : index
        %411 = vector.load %arg6[%c0_112, %c0_113, %c0_114] : memref<1x1x128xf32, #tpu.memory_space<vmem>>, vector<1x1x128xf32>
        tpu.vector_store %arg6[%c0_112, %c0_113, %c0_114], %410 {strides = array<i32>} : memref<1x1x128xf32, #tpu.memory_space<vmem>>, vector<1x1x128xf32>,
      } else {
      }
    } else {
    }
    %c4_i32_56 = arith.constant 4 : i32
    %254 = arith.muli %arg0, %c4_i32_56 : i32
    %c3_i32_57 = arith.constant 3 : i32
    %255 = arith.addi %254, %c3_i32_57 : i32
    %c6_i32_58 = arith.constant 6 : i32
    %256 = arith.cmpi slt, %255, %c6_i32_58 : i32
    %257 = arith.extui %256 : i1 to i32
    %c0_i32_59 = arith.constant 0 : i32
    %258 = arith.cmpi ne, %257, %c0_i32_59 : i32
    scf.if %258 {
      %259 = arith.index_cast %255 : i32 to index
      %260 = memref.load %arg1[%259] : memref<6xi32, #tpu.memory_space<smem>>
      %c9_i32_60 = arith.constant 9 : i32
      %261 = arith.muli %255, %c9_i32_60 : i32
      %c0_i32_61 = arith.constant 0 : i32
      %262 = arith.addi %261, %c0_i32_61 : i32
      %263 = arith.index_cast %262 : i32 to index
      %264 = memref.load %arg2[%263] : memref<54xf32, #tpu.memory_space<smem>>
      %c1_i32_62 = arith.constant 1 : i32
      %265 = arith.addi %261, %c1_i32_62 : i32
      %266 = arith.index_cast %265 : i32 to index
      %267 = memref.load %arg2[%266] : memref<54xf32, #tpu.memory_space<smem>>
      %c2_i32_63 = arith.constant 2 : i32
      %268 = arith.addi %261, %c2_i32_63 : i32
      %269 = arith.index_cast %268 : i32 to index
      %270 = memref.load %arg2[%269] : memref<54xf32, #tpu.memory_space<smem>>
      %c3_i32_64 = arith.constant 3 : i32
      %271 = arith.addi %261, %c3_i32_64 : i32
      %272 = arith.index_cast %271 : i32 to index
      %273 = memref.load %arg2[%272] : memref<54xf32, #tpu.memory_space<smem>>
      %c4_i32_65 = arith.constant 4 : i32
      %274 = arith.addi %261, %c4_i32_65 : i32
      %275 = arith.index_cast %274 : i32 to index
      %276 = memref.load %arg2[%275] : memref<54xf32, #tpu.memory_space<smem>>
      %c5_i32_66 = arith.constant 5 : i32
      %277 = arith.addi %261, %c5_i32_66 : i32
      %278 = arith.index_cast %277 : i32 to index
      %279 = memref.load %arg2[%278] : memref<54xf32, #tpu.memory_space<smem>>
      %c6_i32_67 = arith.constant 6 : i32
      %280 = arith.addi %261, %c6_i32_67 : i32
      %281 = arith.index_cast %280 : i32 to index
      %282 = memref.load %arg2[%281] : memref<54xf32, #tpu.memory_space<smem>>
      %c7_i32_68 = arith.constant 7 : i32
      %283 = arith.addi %261, %c7_i32_68 : i32
      %284 = arith.index_cast %283 : i32 to index
      %285 = memref.load %arg2[%284] : memref<54xf32, #tpu.memory_space<smem>>
      %c8_i32_69 = arith.constant 8 : i32
      %286 = arith.addi %261, %c8_i32_69 : i32
      %287 = arith.index_cast %286 : i32 to index
      %288 = memref.load %arg2[%287] : memref<54xf32, #tpu.memory_space<smem>>
      %c0_i32_70 = arith.constant 0 : i32
      %289 = arith.addi %261, %c0_i32_70 : i32
      %290 = arith.index_cast %289 : i32 to index
      %291 = memref.load %arg3[%290] : memref<54xf32, #tpu.memory_space<smem>>
      %c1_i32_71 = arith.constant 1 : i32
      %292 = arith.addi %261, %c1_i32_71 : i32
      %293 = arith.index_cast %292 : i32 to index
      %294 = memref.load %arg3[%293] : memref<54xf32, #tpu.memory_space<smem>>
      %c2_i32_72 = arith.constant 2 : i32
      %295 = arith.addi %261, %c2_i32_72 : i32
      %296 = arith.index_cast %295 : i32 to index
      %297 = memref.load %arg3[%296] : memref<54xf32, #tpu.memory_space<smem>>
      %c3_i32_73 = arith.constant 3 : i32
      %298 = arith.addi %261, %c3_i32_73 : i32
      %299 = arith.index_cast %298 : i32 to index
      %300 = memref.load %arg3[%299] : memref<54xf32, #tpu.memory_space<smem>>
      %c4_i32_74 = arith.constant 4 : i32
      %301 = arith.addi %261, %c4_i32_74 : i32
      %302 = arith.index_cast %301 : i32 to index
      %303 = memref.load %arg3[%302] : memref<54xf32, #tpu.memory_space<smem>>
      %c5_i32_75 = arith.constant 5 : i32
      %304 = arith.addi %261, %c5_i32_75 : i32
      %305 = arith.index_cast %304 : i32 to index
      %306 = memref.load %arg3[%305] : memref<54xf32, #tpu.memory_space<smem>>
      %c6_i32_76 = arith.constant 6 : i32
      %307 = arith.addi %261, %c6_i32_76 : i32
      %308 = arith.index_cast %307 : i32 to index
      %309 = memref.load %arg3[%308] : memref<54xf32, #tpu.memory_space<smem>>
      %c7_i32_77 = arith.constant 7 : i32
      %310 = arith.addi %261, %c7_i32_77 : i32
      %311 = arith.index_cast %310 : i32 to index
      %312 = memref.load %arg3[%311] : memref<54xf32, #tpu.memory_space<smem>>
      %c8_i32_78 = arith.constant 8 : i32
      %313 = arith.addi %261, %c8_i32_78 : i32
      %314 = arith.index_cast %313 : i32 to index
      %315 = memref.load %arg3[%314] : memref<54xf32, #tpu.memory_space<smem>>
      %316 = arith.index_cast %260 : i32 to index
      %c0_79 = arith.constant 0 : index
      %c0_80 = arith.constant 0 : index
      %317 = vector.load %arg5[%316, %c0_79, %c0_80] : memref<5x8x128xf32, #tpu.memory_space<vmem>>, vector<1x8x128xf32>
      %318 = vector.shape_cast %317 : vector<1x8x128xf32> to vector<8x128xf32>
      %319 = vector.extract_strided_slice %318 {offsets = [0, 0], sizes = [1, 128], strides = [1, 1]} : vector<8x128xf32> to vector<1x128xf32>
      %320 = vector.extract_strided_slice %318 {offsets = [1, 0], sizes = [1, 128], strides = [1, 1]} : vector<8x128xf32> to vector<1x128xf32>
      %321 = vector.extract_strided_slice %318 {offsets = [2, 0], sizes = [1, 128], strides = [1, 1]} : vector<8x128xf32> to vector<1x128xf32>
      %322 = vector.broadcast %264 : f32 to vector<1x128xf32>
      %323 = arith.mulf %322, %319 : vector<1x128xf32>
      %324 = vector.broadcast %267 : f32 to vector<1x128xf32>
      %325 = arith.mulf %324, %320 : vector<1x128xf32>
      %326 = arith.addf %323, %325 : vector<1x128xf32>
      %327 = vector.broadcast %270 : f32 to vector<1x128xf32>
      %328 = arith.mulf %327, %321 : vector<1x128xf32>
      %329 = arith.addf %326, %328 : vector<1x128xf32>
      %330 = vector.broadcast %273 : f32 to vector<1x128xf32>
      %331 = arith.mulf %330, %319 : vector<1x128xf32>
      %332 = vector.broadcast %276 : f32 to vector<1x128xf32>
      %333 = arith.mulf %332, %320 : vector<1x128xf32>
      %334 = arith.addf %331, %333 : vector<1x128xf32>
      %335 = vector.broadcast %279 : f32 to vector<1x128xf32>
      %336 = arith.mulf %335, %321 : vector<1x128xf32>
      %337 = arith.addf %334, %336 : vector<1x128xf32>
      %338 = vector.broadcast %282 : f32 to vector<1x128xf32>
      %339 = arith.mulf %338, %319 : vector<1x128xf32>
      %340 = vector.broadcast %285 : f32 to vector<1x128xf32>
      %341 = arith.mulf %340, %320 : vector<1x128xf32>
      %342 = arith.addf %339, %341 : vector<1x128xf32>
      %343 = vector.broadcast %288 : f32 to vector<1x128xf32>
      %344 = arith.mulf %343, %321 : vector<1x128xf32>
      %345 = arith.addf %342, %344 : vector<1x128xf32>
      %346 = vector.broadcast %291 : f32 to vector<1x128xf32>
      %347 = arith.mulf %346, %319 : vector<1x128xf32>
      %348 = vector.broadcast %294 : f32 to vector<1x128xf32>
      %349 = arith.mulf %348, %320 : vector<1x128xf32>
      %350 = arith.addf %347, %349 : vector<1x128xf32>
      %351 = vector.broadcast %297 : f32 to vector<1x128xf32>
      %352 = arith.mulf %351, %321 : vector<1x128xf32>
      %353 = arith.addf %350, %352 : vector<1x128xf32>
      %354 = vector.broadcast %300 : f32 to vector<1x128xf32>
      %355 = arith.mulf %354, %319 : vector<1x128xf32>
      %356 = vector.broadcast %303 : f32 to vector<1x128xf32>
      %357 = arith.mulf %356, %320 : vector<1x128xf32>
      %358 = arith.addf %355, %357 : vector<1x128xf32>
      %359 = vector.broadcast %306 : f32 to vector<1x128xf32>
      %360 = arith.mulf %359, %321 : vector<1x128xf32>
      %361 = arith.addf %358, %360 : vector<1x128xf32>
      %362 = vector.broadcast %309 : f32 to vector<1x128xf32>
      %363 = arith.mulf %362, %319 : vector<1x128xf32>
      %364 = vector.broadcast %312 : f32 to vector<1x128xf32>
      %365 = arith.mulf %364, %320 : vector<1x128xf32>
      %366 = arith.addf %363, %365 : vector<1x128xf32>
      %367 = vector.broadcast %315 : f32 to vector<1x128xf32>
      %368 = arith.mulf %367, %321 : vector<1x128xf32>
      %369 = arith.addf %366, %368 : vector<1x128xf32>
      %370 = arith.index_cast %255 : i32 to index
      %371 = memref.load %arg4[%370] : memref<6xi32, #tpu.memory_space<smem>>
      %c0_i32_81 = arith.constant 0 : i32
      %372 = arith.cmpi eq, %371, %c0_i32_81 : i32
      %373 = arith.extui %372 : i1 to i32
      %c0_i32_82 = arith.constant 0 : i32
      %374 = arith.cmpi ne, %373, %c0_i32_82 : i32
      scf.if %374 {
        %378 = arith.subf %329, %353 : vector<1x128xf32>
        %379 = arith.mulf %378, %378 : vector<1x128xf32>
        %380 = arith.subf %337, %361 : vector<1x128xf32>
        %381 = arith.mulf %380, %380 : vector<1x128xf32>
        %382 = arith.addf %379, %381 : vector<1x128xf32>
        %383 = arith.subf %345, %369 : vector<1x128xf32>
        %384 = arith.mulf %383, %383 : vector<1x128xf32>
        %385 = arith.addf %382, %384 : vector<1x128xf32>
        %cst_85 = arith.constant 5.000000e-01 : f32
        %386 = vector.broadcast %cst_85 : f32 to vector<1x128xf32>
        %387 = arith.mulf %386, %385 : vector<1x128xf32>
        %cst_86 = arith.constant 0.00999999977 : f32
        %388 = vector.broadcast %cst_86 : f32 to vector<1x128xf32>
        %389 = arith.subf %387, %388 : vector<1x128xf32>
        %cst_87 = arith.constant 0.000000e+00 : f32
        %390 = vector.broadcast %cst_87 : f32 to vector<1x128xf32>
        %391 = arith.maximumf %389, %390 : vector<1x128xf32>
        %c0_88 = arith.constant 0 : index
        %c0_89 = arith.constant 0 : index
        %c0_90 = arith.constant 0 : index
        %392 = vector.load %arg6[%c0_88, %c0_89, %c0_90] : memref<1x1x128xf32, #tpu.memory_space<vmem>>, vector<1x1x128xf32>
        %393 = vector.shape_cast %391 : vector<1x128xf32> to vector<1x1x128xf32>
        %394 = arith.addf %392, %393 : vector<1x1x128xf32>
        %c0_91 = arith.constant 0 : index
        %c0_92 = arith.constant 0 : index
        %c0_93 = arith.constant 0 : index
        %395 = vector.load %arg6[%c0_91, %c0_92, %c0_93] : memref<1x1x128xf32, #tpu.memory_space<vmem>>, vector<1x1x128xf32>
        tpu.vector_store %arg6[%c0_91, %c0_92, %c0_93], %394 {strides = array<i32>} : memref<1x1x128xf32, #tpu.memory_space<vmem>>, vector<1x1x128xf32>,
      } else {
      }
      %c0_i32_83 = arith.constant 0 : i32
      %375 = arith.cmpi ne, %371, %c0_i32_83 : i32
      %376 = arith.extui %375 : i1 to i32
      %c0_i32_84 = arith.constant 0 : i32
      %377 = arith.cmpi ne, %376, %c0_i32_84 : i32
      scf.if %377 {
        %378 = arith.mulf %319, %319 : vector<1x128xf32>
        %379 = arith.mulf %320, %320 : vector<1x128xf32>
        %380 = arith.addf %378, %379 : vector<1x128xf32>
        %381 = arith.mulf %321, %321 : vector<1x128xf32>
        %382 = arith.addf %380, %381 : vector<1x128xf32>
        %cst_85 = arith.constant 2.000000e+00 : f32
        %383 = vector.broadcast %cst_85 : f32 to vector<1x128xf32>
        %384 = arith.mulf %383, %353 : vector<1x128xf32>
        %c0_86 = arith.constant 0 : index
        %c0_87 = arith.constant 0 : index
        %385 = vector.load %arg7[%c0_86, %c0_87] : memref<8x128xf32, #tpu.memory_space<vmem>>, vector<1x128xf32>
        tpu.vector_store %arg7[%c0_86, %c0_87], %384 {strides = array<i32>} : memref<8x128xf32, #tpu.memory_space<vmem>>, vector<1x128xf32>,
        %cst_88 = arith.constant 2.000000e+00 : f32
        %386 = vector.broadcast %cst_88 : f32 to vector<1x128xf32>
        %387 = arith.mulf %386, %361 : vector<1x128xf32>
        %c1 = arith.constant 1 : index
        %c0_89 = arith.constant 0 : index
        %388 = vector.load %arg7[%c1, %c0_89] : memref<8x128xf32, #tpu.memory_space<vmem>>, vector<1x128xf32>
        tpu.vector_store %arg7[%c1, %c0_89], %387 {strides = array<i32>} : memref<8x128xf32, #tpu.memory_space<vmem>>, vector<1x128xf32>,
        %cst_90 = arith.constant 2.000000e+00 : f32
        %389 = vector.broadcast %cst_90 : f32 to vector<1x128xf32>
        %390 = arith.mulf %389, %369 : vector<1x128xf32>
        %c2 = arith.constant 2 : index
        %c0_91 = arith.constant 0 : index
        %391 = vector.load %arg7[%c2, %c0_91] : memref<8x128xf32, #tpu.memory_space<vmem>>, vector<1x128xf32>
        tpu.vector_store %arg7[%c2, %c0_91], %390 {strides = array<i32>} : memref<8x128xf32, #tpu.memory_space<vmem>>, vector<1x128xf32>,
        %c3_92 = arith.constant 3 : index
        %c0_93 = arith.constant 0 : index
        %392 = vector.load %arg7[%c3_92, %c0_93] : memref<8x128xf32, #tpu.memory_space<vmem>>, vector<1x128xf32>
        tpu.vector_store %arg7[%c3_92, %c0_93], %382 {strides = array<i32>} : memref<8x128xf32, #tpu.memory_space<vmem>>, vector<1x128xf32>,
        %c0_94 = arith.constant 0 : index
        %c0_95 = arith.constant 0 : index
        %393 = vector.load %arg8[%c0_94, %c0_95] : memref<8x128xf32, #tpu.memory_space<vmem>>, vector<1x128xf32>
        tpu.vector_store %arg8[%c0_94, %c0_95], %329 {strides = array<i32>} : memref<8x128xf32, #tpu.memory_space<vmem>>, vector<1x128xf32>,
        %c1_96 = arith.constant 1 : index
        %c0_97 = arith.constant 0 : index
        %394 = vector.load %arg8[%c1_96, %c0_97] : memref<8x128xf32, #tpu.memory_space<vmem>>, vector<1x128xf32>
        tpu.vector_store %arg8[%c1_96, %c0_97], %337 {strides = array<i32>} : memref<8x128xf32, #tpu.memory_space<vmem>>, vector<1x128xf32>,
        %c2_98 = arith.constant 2 : index
        %c0_99 = arith.constant 0 : index
        %395 = vector.load %arg8[%c2_98, %c0_99] : memref<8x128xf32, #tpu.memory_space<vmem>>, vector<1x128xf32>
        tpu.vector_store %arg8[%c2_98, %c0_99], %345 {strides = array<i32>} : memref<8x128xf32, #tpu.memory_space<vmem>>, vector<1x128xf32>,
        %c0_100 = arith.constant 0 : index
        %c0_101 = arith.constant 0 : index
        %396 = vector.load %arg7[%c0_100, %c0_101] : memref<8x128xf32, #tpu.memory_space<vmem>>, vector<8x128xf32>
        %c0_102 = arith.constant 0 : index
        %c0_103 = arith.constant 0 : index
        %397 = vector.load %arg8[%c0_102, %c0_103] : memref<8x128xf32, #tpu.memory_space<vmem>>, vector<8x128xf32>
        %cst_104 = arith.constant dense<0.000000e+00> : vector<128x128xf32>
        %398 = tpu.matmul %396, %397, %cst_104 {dimension_numbers = #tpu.dot_dimension_numbers<[0], [0], [1], [1], [0, 1, 1, 1], [], []>} : vector<8x128xf32>, vector<8x128xf32>, vector<128x128xf32> -> vector<128x128xf32>
        %cst_105 = arith.constant dense<0xFF800000> : vector<128xf32>
        %399 = vector.multi_reduction <maximumf>, %398, %cst_105 [0] : vector<128x128xf32> to vector<128xf32>
        %400 = vector.shape_cast %399 : vector<128xf32> to vector<1x128xf32>
        %401 = arith.subf %382, %400 : vector<1x128xf32>
        %cst_106 = arith.constant 5.000000e-01 : f32
        %402 = vector.broadcast %cst_106 : f32 to vector<1x128xf32>
        %403 = arith.mulf %402, %401 : vector<1x128xf32>
        %cst_107 = arith.constant 0.00999999977 : f32
        %404 = vector.broadcast %cst_107 : f32 to vector<1x128xf32>
        %405 = arith.subf %403, %404 : vector<1x128xf32>
        %cst_108 = arith.constant 0.000000e+00 : f32
        %406 = vector.broadcast %cst_108 : f32 to vector<1x128xf32>
        %407 = arith.maximumf %405, %406 : vector<1x128xf32>
        %c0_109 = arith.constant 0 : index
        %c0_110 = arith.constant 0 : index
        %c0_111 = arith.constant 0 : index
        %408 = vector.load %arg6[%c0_109, %c0_110, %c0_111] : memref<1x1x128xf32, #tpu.memory_space<vmem>>, vector<1x1x128xf32>
        %409 = vector.shape_cast %407 : vector<1x128xf32> to vector<1x1x128xf32>
        %410 = arith.addf %408, %409 : vector<1x1x128xf32>
        %c0_112 = arith.constant 0 : index
        %c0_113 = arith.constant 0 : index
        %c0_114 = arith.constant 0 : index
        %411 = vector.load %arg6[%c0_112, %c0_113, %c0_114] : memref<1x1x128xf32, #tpu.memory_space<vmem>>, vector<1x1x128xf32>
        tpu.vector_store %arg6[%c0_112, %c0_113, %c0_114], %410 {strides = array<i32>} : memref<1x1x128xf32, #tpu.memory_space<vmem>>, vector<1x1x128xf32>,
      } else {
      }
    } else {
    }
    return
  }
  func.func @transform_0(%arg0: i32) -> i32 {
    %c0_i32 = arith.constant 0 : i32
    %c0_i32_0 = arith.constant 0 : i32
    return %c0_i32 : i32
  }
  func.func @transform_1(%arg0: i32) -> i32 {
    %c0_i32 = arith.constant 0 : i32
    %c0_i32_0 = arith.constant 0 : i32
    return %c0_i32 : i32
  }
  func.func @transform_2(%arg0: i32) -> i32 {
    %c0_i32 = arith.constant 0 : i32
    %c0_i32_0 = arith.constant 0 : i32
    return %c0_i32 : i32
  }
  func.func @transform_3(%arg0: i32) -> i32 {
    %c0_i32 = arith.constant 0 : i32
    %c0_i32_0 = arith.constant 0 : i32
    return %c0_i32 : i32
  }
  func.func @transform_4(%arg0: i32) -> (i32, i32, i32) {
    %c0_i32 = arith.constant 0 : i32
    %c0_i32_0 = arith.constant 0 : i32
    %c0_i32_1 = arith.constant 0 : i32
    %c0_i32_2 = arith.constant 0 : i32
    return %c0_i32, %c0_i32_0, %c0_i32_1 : i32, i32, i32
  }
  func.func @transform_5(%arg0: i32) -> (i32, i32, i32) {
    %c0_i32 = arith.constant 0 : i32
    %c0_i32_0 = arith.constant 0 : i32
    %c0_i32_1 = arith.constant 0 : i32
    return %arg0, %c0_i32, %c0_i32_0 : i32, i32, i32
  }
}

</mosaic_0001>

<bundles_post_ra>
// kernel: tpu_custom_call.1
= control target key start
LH: loop header
LB: loop body
LE: loop exit
PB: predicated region body
PF: predicated region fallthrough
CT: control target
= control target key end

     0   :  { %s3227_s0 = inlined_call_operand.hbm [shape: s32[6], index: 0, kind: input, shape index: {}]   ;;  %s3228_s1 = inlined_call_operand.vmem [shape: f32[54], index: 1, kind: input, shape index: {}]   ;;  %s3229_s2 = inlined_call_operand.vmem [shape: f32[54], index: 2, kind: input, shape index: {}]   ;;  %s3230_s3 = inlined_call_operand.vmem [shape: s32[6], index: 3, kind: input, shape index: {}]   ;;  %s3231_s4 = inlined_call_operand.hbm [shape: f32[5,8,128], index: 4, kind: input, shape index: {}]   ;;  %s3232_s5 = inlined_call_operand.hbm [shape: f32[2,1,128], index: 5, kind: output, shape index: {}]  }
   0x1   :  { %3246 = sst [smem:[#allocation24_spill]] %s3227_s0 }
   0x2   :  { %3247 = sst [smem:[#allocation25_spill]] %s3228_s1 }
   0x3   :  { %3248 = sst [smem:[#allocation26_spill]] %s3229_s2 }
   0x4   :  { %3249 = sst [smem:[#allocation27_spill]] %s3230_s3 }
   0x5   :  { %3250 = sst [smem:[#allocation28_spill]] %s3231_s4 }
   0x6   :  { %10 = vsyncpa [#allocation7], 0 }
   0x7   :  { %11 = vsyncpa [#allocation8], 0 }
   0x8   :  { %12 = vsyncpa [#allocation11], 0 }
   0x9   :  { %13 = vsyncpa [#allocation5], 0 }
   0xa   :  { %14 = vsyncpa [#allocation6], 0 }
   0xb   :  { %16 = vsyncpa [#allocation6 + $0x1], 0  ;;  %s2631_s18 = smov 0   ;;  %s2633_s19 = smov 0  }
   0xc   :  { %s2635_s20 = smov 0   ;;  %s2637_s21 = smov 0  }
   0xd LB: > { %3251 = sst [smem:[#allocation20_spill]] %s2585_s20  ;;  %s2652_s22 = sadd.s32 4294967295, %s2589_s21   ;;  %s2589_s21 = sphi %s2637_s21, %s3282_s21   ;;  %s2585_s20 = sphi %s2635_s20, %s3284_s20   ;;  %s2581_s19 = sphi %s2633_s19, %s3286_s19   ;;  %s2577_s18 = sphi %s2631_s18, %s3285_s18  }
   0xe   : > { %s2050_s23 = sadd.s32 4294967294, %s2589_s21   ;;  %s2656_s24 = sadd.s32 1, %s2589_s21  }
   0xf   : > { %3252 = sst [smem:[#allocation21_spill]] %s2656_s24  ;;  %s134_s25 = sadd.s32 1, %s2585_s20 }
  0x10   : > { %s131_s26 = ssub.s32 %s2589_s21, %s2656_s24  ;;  %p144_p0 = scmp.ne.s32.totalorder %s2585_s20, %s2581_s19 }
  0x11   : > { %p132_p1 = scmp.eq.s32.totalorder %s131_s26, 0  ;;  %p145_p2 = scmp.eq.s32.totalorder %s2652_s22, 1 }
  0x12   : > { %p150_p3 = scmp.ne.s32.totalorder %s2581_s19, %s2577_s18  ;;  %p151_p4 = scmp.eq.s32.totalorder %s2050_s23, 1 }
  0x13   : > { %s2667_s27 = scalar_select %p132_p1, %s2585_s20, %s134_s25  }
  0x14   : > { %p2669_p5 = por %p145_p2, %p144_p0  ;;  %p2673_p6 = por %p151_p4, %p150_p3 }
  0x15   : > { %3253 = sst [smem:[#allocation22_spill]] %s2667_s27  ;;  %p2051_p7 = scmp.ge.s32.totalorder %s2589_s21, 1 }
  0x16   : > { %s3255_s29 = scalar_select %p2673_p6, 1, 0 }
  0x17   : > { %p158_p8 = scmp.lt.s32.totalorder %s2589_s21, 3  ;;  %p3233_p9 = scmp.eq.s32.totalorder %s2652_s22, 0 }
  0x18   : > { %3256 = sst [smem:[#allocation23_spill]] %s3255_s29 }
  0x19   : > { %p2680_p10 = pnand %p2051_p7, %p158_p8  ;;  %s3258_s2 = sld [smem:[#allocation26_spill]] }
  0x1a   : > { %s3259_s1 = sld [smem:[#allocation25_spill]] }
  0x1b   : > { %p2355_p11 = pneg %p2680_p10  ;;  %s3261_s3 = sld [smem:[#allocation27_spill]] }
  0x1d   : > { %p2694_p12 = pnand %p3233_p9, %p2355_p11 }
  0x1f   : > { %s191_s8 = sshll.u32 %s3258_s2, 4  ;;  %p2433_p0 = pneg %p2694_p12  ;;  %s192_s8 = int_to_ptr.vmem [resolvable:$true] %s191_s8 }
  0x20   : > { %s180_s11 = sshll.u32 %s3259_s1, 4  ;;  %s2431_s16 = scalar_lea.vmem %s192_s8, 16  ;;  %s181_s11 = int_to_ptr.vmem [resolvable:$true] %s180_s11 }
  0x21   : > { %s202_s15 = sshll.u32 %s3261_s3, 4  ;;  %p2432_p13 = scmp.ne.s32.totalorder %s192_s8, %s2431_s16  ;;  %s2701_s15 = int_to_ptr.vmem [resolvable:$true] %s202_s15 }
  0x22   : > { %p2439_p3 = scmp.lt.s32.totalorder %s192_s8, %s192_s8  ;;  %p2440_p4 = scmp.lt.s32.totalorder %s2431_s16, %s2431_s16 }
  0x23   : > { %p2434_p1 = pnand %p2433_p0, %p2432_p13 }
  0x24   : > { %p2441_p7 = por %p2440_p4, %p2439_p3 }
  0x25   : > { %p2435_p2 = pneg %p2434_p1 }
  0x27   : > { %p2442_p8 = pnand %p2441_p7, %p2435_p2 }
  0x29   : > { %2445 = shalt.err (!%p2442_p8)
}
  0x2a   : > { %s2591_s17 = smov [#allocation10]   ;;  %s2592_s23 = smov [#allocation4]  }
  0x2b   : > { %2364 = dma.vmem_to_smem (!%p2694_p12), %s192_s8, 16, %s2591_s17, [#allocation11]  }
  0x2c   : > { %s3262_s0 = sld [smem:[#allocation24_spill]]  ;;  %s2457_s6 = scalar_lea.vmem %s181_s11, 16 }
  0x2d   : > { %p2458_p11 = scmp.ne.s32.totalorder %s181_s11, %s2457_s6  ;;  %p2465_p2 = scmp.lt.s32.totalorder %s181_s11, %s181_s11 }
  0x2e   : > { %p2466_p3 = scmp.lt.s32.totalorder %s2457_s6, %s2457_s6 }
  0x2f   : > { %p2460_p13 = pnand %p2458_p11, %p2433_p0 }
  0x30   : > { %p2467_p4 = por %p2466_p3, %p2465_p2 }
  0x31   : > { %p2461_p1 = pneg %p2460_p13 }
  0x32   : > { %2358 = dma.hbm_to_smem (!%p2694_p12), %s3262_s0, 16, %s2592_s23, [#allocation7]  }
  0x33   : > { %p2468_p7 = pnand %p2467_p4, %p2461_p1 }
  0x35   : > { %2471 = shalt.err (!%p2468_p7)
}
  0x36   : > { %s2593_s7 = smov [#allocation9]   ;;  %s2472_s8 = scalar_lea.vmem %s2701_s15, 16 }
  0x37   : > { %2361 = dma.vmem_to_smem (!%p2694_p12), %s181_s11, 16, %s2593_s7, [#allocation8]  }
  0x38   : > { %p2473_p8 = scmp.ne.s32.totalorder %s2701_s15, %s2472_s8  ;;  %p2480_p13 = scmp.lt.s32.totalorder %s2701_s15, %s2701_s15 }
  0x39   : > { %p2481_p6 = scmp.lt.s32.totalorder %s2472_s8, %s2472_s8 }
  0x3a   : > { %p2475_p9 = pnand %p2473_p8, %p2433_p0 }
  0x3b   : > { %p2482_p2 = por %p2481_p6, %p2480_p13 }
  0x3c   : > { %p2476_p11 = pneg %p2475_p9 }
  0x3e   : > { %p2483_p1 = pnand %p2482_p2, %p2476_p11 }
  0x40   : > { %2486 = shalt.err (!%p2483_p1)
}
  0x41   : > { %s2594_s9 = smov [#allocation12]   ;;  %s2595_s10 = smov [#allocation13]  }
  0x42   : > { %2367 = dma.vmem_to_smem (!%p2694_p12), %s2701_s15, 16, %s2594_s9, [#allocation11]  }
  0x43   : > { %s212_s11 = sshll.u32 %s2595_s10, 4  ;;  %s213_s11 = int_to_ptr.vmem [resolvable:$true] %s212_s11 }
  0x44   : > { %s2498_s13 = scalar_lea.vmem %s213_s11, 640  ;;  %p2506_p7 = scmp.lt.s32.totalorder %s213_s11, %s213_s11 }
  0x45   : > { %p2499_p3 = scmp.ne.s32.totalorder %s213_s11, %s2498_s13  ;;  %p2507_p8 = scmp.lt.s32.totalorder %s2498_s13, %s2498_s13 }
  0x47   : > { %p2501_p9 = pnand %p2499_p3, %p2433_p0  ;;  %p2508_p6 = por %p2507_p8, %p2506_p7 }
  0x49   : > { %p2502_p4 = pneg %p2501_p9 }
  0x4b   : > { %p2509_p11 = pnand %p2508_p6, %p2502_p4 }
  0x4d   : > { %2512 = shalt.err (!%p2509_p11)
}
  0x4e   : > { %s2596_s14 = smov 128   ;;  %s2597_s16 = smov 8  }
  0x4f   : > { %s3263_s4 = sld [smem:[#allocation28_spill]]  ;;  %p3264_p13 = scmp.eq.s32.totalorder (!%p2680_p10), %s2652_s22, 0 }
  0x51   : > { %228 = sbr.rel (%p2680_p10) target bundleno = 2054 (0x806), region = 40 }
  0x55   : > { %2370 = dma.hbm_to_vmem [thread:$0]  (!%p2694_p12), %s3263_s4, 640, %s213_s11, [#allocation5], %s2596_s14, %s2596_s14, %s2597_s16  }
  0x56   : > { %2556 = dma.done.wait (%p3264_p13), [#allocation7], 16   ;;  %p3265_p0 = pmov %p3264_p13 }
  0x58   : > { %2558 = vsyncadd (%p3265_p0), [#allocation7], 4294967280  ;;  %p3266_p2 = pmov %p3265_p0 }
  0x59   : > { %p3267_p1 = pmov %p3265_p0 }
  0x5a   : > { %2560 = dma.done.wait (%p3266_p2), [#allocation8], 16  }
  0x5b   : > { %2562 = vsyncadd (%p3267_p1), [#allocation8], 4294967280  ;;  %p3268_p3 = pmov %p3265_p0 }
  0x5c   : > { %p3269_p12 = pmov %p3265_p0 }
  0x5d   : > { %2564 = dma.done.wait (%p3268_p3), [#allocation11], 32  }
  0x5e   : > { %2566 = vsyncadd (%p3269_p12), [#allocation11], 4294967264  ;;  %p3270_p10 = pmov %p3265_p0 }
  0x5f   : > { %p3271_p9 = pmov %p3265_p0 }
  0x60   : > { %2568 = dma.done.wait (%p3270_p10), [#allocation5], 640  }
  0x61   : > { %2570 = vsyncadd (%p3271_p9), [#allocation5], 4294966656 }
  0x62   : > { %250 = sfence }
  0x63   : > { %s3234_s30 = sand.u32 1, %s2581_s19   ;;  %s2758_s12 = sshll.u32 %s2652_s22, 2  ;;  %v2598_v0 = vmov 0.0   ;;  %v2599_v1 = vmov -1.0  }
  0x64   : > { %268 = vst [vmem:[#allocation2 + $0x4] sm:$0xf] %v2598_v0  ;;  %270 = vst [vmem:[#allocation3 + $0x4] sm:$0xf] %v2598_v0  ;;  %s2762_s23 = scalar_lea.vmem [#allocation14], %s3234_s30  ;;  %s2766_s25 = smul.u32 36, %s2652_s22 }
  0x65   : > { %269 = vst [vmem:[#allocation3 + $0x3] sm:$0x1] %v2599_v1  ;;  %267 = vst [vmem:[%s2762_s23] sm:$0x1] %v2598_v0  ;;  %s2769_s26 = sld [smem:[#allocation12 + %s2758_s12]] }
  0x66   : > { %s272_s6 = sld [smem:[#allocation4 + %s2758_s12]]  ;;  %s275_s8 = sadd.s32 1, %s2766_s25 }
  0x67   : > { %s274_s7 = sld [smem:[#allocation9 + %s2766_s25]]  ;;  %s277_s10 = sadd.s32 2, %s2766_s25 }
  0x68   : > { %s276_s9 = sld [smem:[#allocation9 + %s275_s8]]  ;;  %s279_s13 = sadd.s32 3, %s2766_s25 }
  0x69   : > { %s278_s11 = sld [smem:[#allocation9 + %s277_s10]]  ;;  %s281_s16 = sadd.s32 4, %s2766_s25 }
  0x6a   : > { %s280_s14 = sld [smem:[#allocation9 + %s279_s13]]  ;;  %s3239_s15 = sadd.s32 5, %s2766_s25 }
  0x6b   : > { %s282_s17 = sld [smem:[#allocation9 + %s281_s16]]  ;;  %s285_s0 = sadd.s32 6, %s2766_s25 }
  0x6c   : > { %s284_s30 = sld [smem:[#allocation9 + %s3239_s15]]  ;;  %s3240_s2 = sadd.s32 7, %s2766_s25 }
  0x6d   : > { %s286_s1 = sld [smem:[#allocation9 + %s285_s0]]  ;;  %s289_s4 = sadd.s32 8, %s2766_s25  ;;  %v303_v2 = vstv %s274_s7 }
  0x6e   : > { %s2786_s3 = sld [smem:[#allocation9 + %s3240_s2]]  ;;  %s2064_s20 = sshll.u32 %s272_s6, 3  ;;  %v305_v3 = vstv %s276_s9 }
  0x6f   : > { %s2791_s27 = sld [smem:[#allocation9 + %s289_s4]]  ;;  %v311_v4 = vstv %s278_s11  ;;  %s301_s15 = scalar_lea.vmem [#allocation13], %s2064_s20 }
  0x70   : > { %s2794_s24 = sld [smem:[#allocation10 + %s2766_s25]]  ;;  %v317_v5 = vstv %s280_s14  ;;  %v2798_v6 = vld [vmem:[%s301_s15] sm:$0xff]  ;;  %s3272_s7 = sadd.s32 5, %s2766_s25 }
  0x71   : > { %s2796_s29 = sld [smem:[#allocation10 + %s275_s8]]  ;;  %v319_v7 = vstv %s282_s17  ;;  %v304_v8 = vmul.f32 %v303_v2, %v2798_v6  ;;  %v306_v9 = vmul.f32 %v305_v3, %v2798_v6  ;;  %v312_v10 = vmul.f32 %v311_v4, %v2798_v6  ;;  %p2065_p4 = scmp.ne.s32.totalorder %s2769_s26, 0 }
  0x72   : > { %s2800_s2 = sld [smem:[#allocation10 + %s277_s10]]  ;;  %v318_v11 = vmul.f32 %v317_v5, %v2798_v6  ;;  %v320_v12 = vmul.f32 %v319_v7, %v2798_v6  ;;  %v325_v13 = vstv %s284_s30 }
  0x73   : > { %s2805_s6 = sld [smem:[#allocation10 + %s279_s13]]  ;;  %v331_v14 = vstv %s286_s1  ;;  %v308_v15 = vrot.slane %v306_v9, 1  ;;  %v314_v16 = vrot.slane %v312_v10, 2  ;;  %v326_v17 = vmul.f32 %v325_v13, %v2798_v6  ;;  %s3273_s1 = sadd.s32 7, %s2766_s25 }
  0x74   : > { %s2809_s20 = sld [smem:[#allocation10 + %s281_s16]]  ;;  %v322_v18 = vrot.slane %v320_v12, 1  ;;  %v332_v19 = vmul.f32 %v331_v14, %v2798_v6  ;;  %v333_v20 = vstv %s2786_s3 }
  0x75   : > { %s2814_s8 = sld [smem:[#allocation10 + %s3272_s7]]  ;;  %v339_v21 = vstv %s2791_s27  ;;  %v310_v22 = vadd.f32 %v308_v15, %v304_v8  ;;  %v328_v23 = vrot.slane %v326_v17, 2  ;;  %v334_v24 = vmul.f32 %v333_v20, %v2798_v6 }
  0x76   : > { %s2821_s30 = sld [smem:[#allocation10 + %s285_s0]]  ;;  %v340_v25 = vmul.f32 %v339_v21, %v2798_v6  ;;  %v324_v26 = vadd.f32 %v322_v18, %v318_v11  ;;  %v345_v27 = vstv %s2794_s24 }
  0x77   : > { %s298_s9 = sld [smem:[#allocation10 + %s3273_s1]]  ;;  %v347_v28 = vstv %s2796_s29  ;;  %v316_v29 = vadd.f32 %v314_v16, %v310_v22  ;;  %v336_v30 = vrot.slane %v334_v24, 1  ;;  %v346_v32 = vmul.f32 %v345_v27, %v2798_v6 }
  0x78   : > { %s299_s3 = sld [smem:[#allocation10 + %s289_s4]]  ;;  %v342_v31 = vrot.slane %v340_v25, 2  ;;  %v330_v33 = vadd.f32 %v328_v23, %v324_v26  ;;  %v348_v34 = vmul.f32 %v347_v28, %v2798_v6  ;;  %v353_v35 = vstv %s2800_s2 }
  0x79   : > { %v359_v36 = vstv %s2805_s6  ;;  %v338_v37 = vadd.f32 %v336_v30, %v332_v19  ;;  %v354_v38 = vmul.f32 %v353_v35, %v2798_v6 }
  0x7a   : > { %v361_v39 = vstv %s2809_s20  ;;  %v350_v40 = vrot.slane %v348_v34, 1  ;;  %v360_v41 = vmul.f32 %v359_v36, %v2798_v6 }
  0x7b   : > { %v362_v42 = vmul.f32 %v361_v39, %v2798_v6  ;;  %v367_v43 = vstv %s2814_s8  ;;  %v344_v44 = vadd.f32 %v342_v31, %v338_v37  ;;  %v356_v45 = vrot.slane %v354_v38, 2 }
  0x7c   : > { %v368_v46 = vmul.f32 %v367_v43, %v2798_v6  ;;  %v373_v47 = vstv %s2821_s30  ;;  %v352_v48 = vadd.f32 %v350_v40, %v346_v32 }
  0x7d   : > { %v364_v49 = vrot.slane %v362_v42, 1  ;;  %v375_v50 = vstv %s298_s9  ;;  %v374_v52 = vmul.f32 %v373_v47, %v2798_v6 }
  0x7e   : > { %v370_v51 = vrot.slane %v368_v46, 2  ;;  %v376_v53 = vmul.f32 %v375_v50, %v2798_v6  ;;  %v381_v54 = vstv %s299_s3  ;;  %v358_v55 = vadd.f32 %v356_v45, %v352_v48 }
  0x7f   : > { %v366_v56 = vadd.f32 %v364_v49, %v360_v41  ;;  %v382_v57 = vmul.f32 %v381_v54, %v2798_v6 }
  0x80   : > { %v378_v58 = vrot.slane %v376_v53, 1  ;;  %391 = sbr.rel (%p2065_p4) target bundleno = 150 (0x96), region = 64 }
  0x81   : > { %v372_v59 = vadd.f32 %v370_v51, %v366_v56  ;;  %v384_v60 = vrot.slane %v382_v57, 2 }
  0x82   : > { %v380_v61 = vadd.f32 %v378_v58, %v374_v52 }
  0x84   : > { %v386_v62 = vadd.f32 %v384_v60, %v380_v61 }
  0x85   : > { %v392_v63 = vsub.f32 %v316_v29, %v358_v55  ;;  %v394_v0 = vsub.f32 %v330_v33, %v372_v59  ;;  %v403_v10 = vld [vmem:[%s2762_s23] sm:$0x1] }
  0x86   : > { %v397_v1 = vsub.f32 %v344_v44, %v386_v62 }
  0x87   : > { %v393_v2 = vmul.f32 %v392_v63, %v392_v63  ;;  %v395_v3 = vmul.f32 %v394_v0, %v394_v0 }
  0x88   : > { %v398_v4 = vmul.f32 %v397_v1, %v397_v1 }
  0x89   : > { %v396_v5 = vadd.f32 %v395_v3, %v393_v2 }
  0x8b   : > { %v399_v7 = vadd.f32 %v398_v4, %v396_v5 }
  0x8d   : > { %v400_v8 = vmul.f32 0.5, %v399_v7 }
  0x8f   : > { %v2066_v9 = vadd.f32 -0.01, %v400_v8 }
  0x91   : > { %v402_v11 = vmax.f32 %v2066_v9, 0.0 }
  0x93   : > { %v404_v12 = vadd.f32 %v403_v10, %v402_v11 }
  0x95   : > { %405 = vst [vmem:[%s2762_s23] sm:$0x1] %v404_v12 }
  0x96 PF: > { %p2067_p7 = scmp.eq.s32.totalorder %s2769_s26, 0 }
  0x98   : > { %409 = sbr.rel (%p2067_p7) target bundleno = 582 (0x246), region = 68 }
  0x9d   : > { %v410_v13 = vmul.f32 %v2798_v6, %v2798_v6  ;;  %v418_v14 = vmul.f32 2.0, %v358_v55  ;;  %v420_v15 = vmul.f32 2.0, %v372_v59  ;;  %v422_v16 = vmul.f32 2.0, %v386_v62  ;;  %425 = vst [vmem:[#allocation3] sm:$0x1] %v316_v29 }
  0x9e   : > { %426 = vst [vmem:[#allocation3 + $0x1] sm:$0x1] %v330_v33  ;;  %427 = vst [vmem:[#allocation3 + $0x2] sm:$0x1] %v344_v44  ;;  %vm462_vm0 = vcmask 64512  }
  0x9f   : > { %v412_v17 = vrot.slane %v410_v13, 1  ;;  %v415_v18 = vrot.slane %v410_v13, 2  ;;  %419 = vst [vmem:[#allocation2] sm:$0x1] %v418_v14  ;;  %421 = vst [vmem:[#allocation2 + $0x1] sm:$0x1] %v420_v15 }
  0xa0   : > { %423 = vst [vmem:[#allocation2 + $0x2] sm:$0x1] %v422_v16  ;;  %v681_v15 = vld [vmem:[%s2762_s23] sm:$0x1] }
  0xa1   : > { %v414_v19 = vadd.f32 %v412_v17, %v410_v13 }
  0xa3   : > { %v2851_v20 = vadd.f32 %v415_v18, %v414_v19 }
  0xa5   : > { %424 = vst [vmem:[#allocation2 + $0x3] sm:$0x1] %v2851_v20  ;;  %v429_v21 = vld [vmem:[#allocation3] sm:$0xff] }
  0xa6   : > { %2221 = vmatprep.subr.mxu0 %v429_v21  ;;  %2325 = vmatprep.subr.mxu1 %v429_v21 }
  0xa7   : > { %2222 = vmatpush3.msra.mxu0 %v429_v21  ;;  %2326 = vmatpush3.msra.mxu1 %v429_v21 }
  0xac   : > { %v428_v6 = vld [vmem:[#allocation2] sm:$0xff] }
  0xad   : > { %430 = vxpose.xlu0.b32.start.end [1/1] (short) %v428_v6, 128 }
 0x129   : > { %v446_v22 = vpop.trf.xlu0 }
 0x12a   : > { %2223 = vmatprep.mubr.msk.f32.mxu0 %vm462_vm0, %v446_v22 }
 0x12d   : > { %v447_v23 = vpop.trf.xlu0 }
 0x12e   : > { %2224 = vmatmul.mubr.msk.f32.vlgmr.msra.gmra.mxu0 %vm462_vm0, %v447_v23 }
 0x131   : > { %v448_v24 = vpop.trf.xlu0 }
 0x132   : > { %2226 = vmatprep.mubr.msk.f32.mxu0 %vm462_vm0, %v448_v24 }
 0x135   : > { %v449_v25 = vpop.trf.xlu0 }
 0x136   : > { %2227 = vmatmul.mubr.msk.f32.gmra.mxu0 %vm462_vm0, %v449_v25 }
 0x139   : > { %v450_v26 = vpop.trf.xlu0 }
 0x13a   : > { %2229 = vmatprep.mubr.msk.f32.mxu0 %vm462_vm0, %v450_v26 }
 0x13d   : > { %v451_v27 = vpop.trf.xlu0 }
 0x13e   : > { %2230 = vmatmul.mubr.msk.f32.gmra.mxu0 %vm462_vm0, %v451_v27 }
 0x141   : > { %v452_v28 = vpop.trf.xlu0 }
 0x142   : > { %2232 = vmatprep.mubr.msk.f32.mxu0 %vm462_vm0, %v452_v28 }
 0x145   : > { %v453_v29 = vpop.trf.xlu0 }
 0x146   : > { %2233 = vmatmul.mubr.msk.f32.gmra.mxu0 %vm462_vm0, %v453_v29 }
 0x149   : > { %v454_v30 = vpop.trf.xlu0 }
 0x14a   : > { %2235 = vmatprep.mubr.msk.f32.mxu1 %vm462_vm0, %v454_v30 }
 0x14d   : > { %v455_v31 = vpop.trf.xlu0 }
 0x14e   : > { %2236 = vmatmul.mubr.msk.f32.vlgmr.msra.gmra.mxu1 %vm462_vm0, %v455_v31 }
 0x151   : > { %v456_v32 = vpop.trf.xlu0 }
 0x152   : > { %2238 = vmatprep.mubr.msk.f32.mxu1 %vm462_vm0, %v456_v32 }
 0x155   : > { %v457_v33 = vpop.trf.xlu0 }
 0x156   : > { %2239 = vmatmul.mubr.msk.f32.gmra.mxu1 %vm462_vm0, %v457_v33 }
 0x159   : > { %v458_v34 = vpop.trf.xlu0 }
 0x15a   : > { %2241 = vmatprep.mubr.msk.f32.mxu1 %vm462_vm0, %v458_v34 }
 0x15d   : > { %v459_v35 = vpop.trf.xlu0 }
 0x15e   : > { %2242 = vmatmul.mubr.msk.f32.gmra.mxu1 %vm462_vm0, %v459_v35 }
 0x161   : > { %v460_v36 = vpop.trf.xlu0 }
 0x162   : > { %2244 = vmatprep.mubr.msk.f32.mxu1 %vm462_vm0, %v460_v36 }
 0x165   : > { %v461_v37 = vpop.trf.xlu0 }
 0x166   : > { %2245 = vmatmul.mubr.msk.f32.gmra.mxu1 %vm462_vm0, %v461_v37 }
 0x1ee   : > { %v2225_v38 = vpop.f32.mrf.mxu0 }
 0x1f0   : > { %v577_v39 = vpop.f32.mrf.mxu0 }
 0x1f6   : > { %v2228_v40 = vpop.f32.mrf.mxu0 }
 0x1f8   : > { %v587_v42 = vpop.f32.mrf.mxu0 }
 0x1fe   : > { %v2231_v43 = vpop.f32.mrf.mxu0 }
 0x1ff   : > { %v657_v53 = vmax.f32 %v2225_v38, %v2231_v43 }
 0x200   : > { %v597_v46 = vpop.f32.mrf.mxu0 }
 0x201   : > { %v656_v51 = vmax.f32 %v577_v39, %v597_v46 }
 0x206   : > { %v2234_v47 = vpop.f32.mrf.mxu0 }
 0x207   : > { %v659_v54 = vmax.f32 %v2228_v40, %v2234_v47 }
 0x208   : > { %v607_v50 = vpop.f32.mrf.mxu0 }
 0x209   : > { %v658_v55 = vmax.f32 %v587_v42, %v607_v50 }
 0x20e   : > { %v2237_v41 = vpop.f32.mrf.mxu1 }
 0x20f   : > { %v661_v58 = vmax.f32 %v657_v53, %v2237_v41 }
 0x210   : > { %v617_v44 = vpop.f32.mrf.mxu1 }
 0x211   : > { %v660_v56 = vmax.f32 %v656_v51, %v617_v44 }
 0x216   : > { %v2240_v45 = vpop.f32.mrf.mxu1 }
 0x217   : > { %v663_v59 = vmax.f32 %v659_v54, %v2240_v45 }
 0x218   : > { %v627_v48 = vpop.f32.mrf.mxu1 }
 0x219   : > { %v662_v60 = vmax.f32 %v658_v55, %v627_v48 }
 0x21e   : > { %v2243_v49 = vpop.f32.mrf.mxu1 }
 0x21f   : > { %v665_v63 = vmax.f32 %v661_v58, %v2243_v49 }
 0x220   : > { %v637_v52 = vpop.f32.mrf.mxu1 }
 0x221   : > { %v664_v61 = vmax.f32 %v660_v56, %v637_v52 }
 0x223   : > { %v668_v2 = vmax.f32 %v664_v61, %v665_v63 }
 0x226   : > { %v2246_v57 = vpop.f32.mrf.mxu1 }
 0x227   : > { %v667_v0 = vmax.f32 %v663_v59, %v2246_v57 }
 0x228   : > { %v647_v62 = vpop.f32.mrf.mxu1 }
 0x229   : > { %v666_v1 = vmax.f32 %v662_v60, %v647_v62 }
 0x22b   : > { %v669_v3 = vmax.f32 %v666_v1, %v667_v0 }
 0x22d   : > { %v670_v4 = vmax.f32 %v668_v2, %v669_v3 }
 0x22f   : > { %v671_v5 = vrot.slane %v670_v4, 4 }
 0x231   : > { %v672_v7 = vmax.f32 %v670_v4, %v671_v5 }
 0x233   : > { %v673_v8 = vrot.slane %v672_v7, 2 }
 0x235   : > { %v674_v9 = vmax.f32 %v672_v7, %v673_v8 }
 0x237   : > { %v675_v10 = vrot.slane %v674_v9, 1 }
 0x239   : > { %v676_v11 = vmax.f32 %v674_v9, %v675_v10 }
 0x23b   : > { %v677_v12 = vsub.f32 %v2851_v20, %v676_v11 }
 0x23d   : > { %v678_v13 = vmul.f32 0.5, %v677_v12 }
 0x23f   : > { %v2084_v14 = vadd.f32 -0.01, %v678_v13 }
 0x241   : > { %v680_v16 = vmax.f32 %v2084_v14, 0.0 }
 0x243   : > { %v682_v17 = vadd.f32 %v681_v15, %v680_v16 }
 0x245   : > { %683 = vst [vmem:[%s2762_s23] sm:$0x1] %v682_v17 }
 0x246 PF: > { %s684_s0 = sadd.s32 1, %s2758_s12 }
 0x247   : > { %s685_s2 = sld [smem:[#allocation4 + %s684_s0]]  ;;  %s2874_s4 = smul.u32 9, %s684_s0 }
 0x248   : > { %s2876_s24 = sld [smem:[#allocation12 + %s684_s0]] }
 0x249   : > { %s687_s27 = sld [smem:[#allocation9 + %s2874_s4]]  ;;  %s688_s29 = sadd.s32 1, %s2874_s4 }
 0x24a   : > { %s689_s25 = sld [smem:[#allocation9 + %s688_s29]]  ;;  %s690_s26 = sadd.s32 2, %s2874_s4 }
 0x24b   : > { %s691_s10 = sld [smem:[#allocation9 + %s690_s26]]  ;;  %s692_s11 = sadd.s32 3, %s2874_s4 }
 0x24c   : > { %s693_s13 = sld [smem:[#allocation9 + %s692_s11]]  ;;  %s694_s14 = sadd.s32 4, %s2874_s4 }
 0x24d   : > { %s695_s16 = sld [smem:[#allocation9 + %s694_s14]]  ;;  %s3241_s17 = sadd.s32 5, %s2874_s4 }
 0x24e   : > { %s697_s15 = sld [smem:[#allocation9 + %s3241_s17]]  ;;  %s698_s6 = sadd.s32 6, %s2874_s4 }
 0x24f   : > { %s699_s20 = sld [smem:[#allocation9 + %s698_s6]]  ;;  %s3242_s7 = sadd.s32 7, %s2874_s4  ;;  %v716_v18 = vstv %s687_s27 }
 0x250   : > { %s2892_s8 = sld [smem:[#allocation9 + %s3242_s7]]  ;;  %s702_s30 = sadd.s32 8, %s2874_s4  ;;  %v718_v19 = vstv %s689_s25 }
 0x251   : > { %s2897_s1 = sld [smem:[#allocation9 + %s702_s30]]  ;;  %s2085_s9 = sshll.u32 %s685_s2, 3  ;;  %v724_v20 = vstv %s691_s10 }
 0x252   : > { %s2900_s3 = sld [smem:[#allocation10 + %s2874_s4]]  ;;  %v730_v21 = vstv %s693_s13  ;;  %s714_s17 = scalar_lea.vmem [#allocation13], %s2085_s9 }
 0x253   : > { %s2902_s0 = sld [smem:[#allocation10 + %s688_s29]]  ;;  %v2904_v6 = vld [vmem:[%s714_s17] sm:$0xff]  ;;  %v732_v22 = vstv %s695_s16  ;;  %s3274_s29 = sadd.s32 5, %s2874_s4 }
 0x254   : > { %s2906_s7 = sld [smem:[#allocation10 + %s690_s26]]  ;;  %v717_v23 = vmul.f32 %v716_v18, %v2904_v6  ;;  %v719_v24 = vmul.f32 %v718_v19, %v2904_v6  ;;  %v725_v25 = vmul.f32 %v724_v20, %v2904_v6  ;;  %v731_v26 = vmul.f32 %v730_v21, %v2904_v6  ;;  %s3275_s10 = sadd.s32 7, %s2874_s4 }
 0x255   : > { %s2911_s2 = sld [smem:[#allocation10 + %s692_s11]]  ;;  %v733_v27 = vmul.f32 %v732_v22, %v2904_v6  ;;  %v738_v28 = vstv %s697_s15  ;;  %v744_v29 = vstv %s699_s20  ;;  %p2086_p8 = scmp.ne.s32.totalorder %s2876_s24, 0 }
 0x256   : > { %s2915_s27 = sld [smem:[#allocation10 + %s694_s14]]  ;;  %v721_v30 = vrot.slane %v719_v24, 1  ;;  %v727_v31 = vrot.slane %v725_v25, 2  ;;  %v739_v32 = vmul.f32 %v738_v28, %v2904_v6  ;;  %v745_v34 = vmul.f32 %v744_v29, %v2904_v6 }
 0x257   : > { %s2920_s25 = sld [smem:[#allocation10 + %s3274_s29]]  ;;  %v735_v33 = vrot.slane %v733_v27, 1  ;;  %v746_v35 = vstv %s2892_s8  ;;  %v752_v36 = vstv %s2897_s1 }
 0x258   : > { %s2927_s26 = sld [smem:[#allocation10 + %s698_s6]]  ;;  %v723_v37 = vadd.f32 %v721_v30, %v717_v23  ;;  %v741_v38 = vrot.slane %v739_v32, 2  ;;  %v747_v39 = vmul.f32 %v746_v35, %v2904_v6  ;;  %v753_v40 = vmul.f32 %v752_v36, %v2904_v6 }
 0x259   : > { %s711_s11 = sld [smem:[#allocation10 + %s3275_s10]]  ;;  %v737_v41 = vadd.f32 %v735_v33, %v731_v26  ;;  %v758_v42 = vstv %s2900_s3  ;;  %v760_v43 = vstv %s2902_s0 }
 0x25a   : > { %s712_s13 = sld [smem:[#allocation10 + %s702_s30]]  ;;  %v729_v44 = vadd.f32 %v727_v31, %v723_v37  ;;  %v749_v45 = vrot.slane %v747_v39, 1  ;;  %v755_v46 = vrot.slane %v753_v40, 2  ;;  %v759_v47 = vmul.f32 %v758_v42, %v2904_v6 }
 0x25b   : > { %v743_v48 = vadd.f32 %v741_v38, %v737_v41  ;;  %v761_v49 = vmul.f32 %v760_v43, %v2904_v6  ;;  %v766_v50 = vstv %s2906_s7  ;;  %v772_v51 = vstv %s2911_s2 }
 0x25c   : > { %v751_v52 = vadd.f32 %v749_v45, %v745_v34  ;;  %v767_v53 = vmul.f32 %v766_v50, %v2904_v6  ;;  %v774_v54 = vstv %s2915_s27  ;;  %v773_v56 = vmul.f32 %v772_v51, %v2904_v6 }
 0x25d   : > { %v763_v55 = vrot.slane %v761_v49, 1  ;;  %v775_v57 = vmul.f32 %v774_v54, %v2904_v6  ;;  %v780_v58 = vstv %s2920_s25 }
 0x25e   : > { %v757_v59 = vadd.f32 %v755_v46, %v751_v52  ;;  %v769_v60 = vrot.slane %v767_v53, 2  ;;  %v781_v61 = vmul.f32 %v780_v58, %v2904_v6  ;;  %v786_v62 = vstv %s2927_s26 }
 0x25f   : > { %v765_v63 = vadd.f32 %v763_v55, %v759_v47  ;;  %v777_v0 = vrot.slane %v775_v57, 1  ;;  %v788_v1 = vstv %s711_s11  ;;  %v787_v3 = vmul.f32 %v786_v62, %v2904_v6 }
 0x260   : > { %v783_v2 = vrot.slane %v781_v61, 2  ;;  %v789_v4 = vmul.f32 %v788_v1, %v2904_v6  ;;  %v794_v5 = vstv %s712_s13 }
 0x261   : > { %v771_v7 = vadd.f32 %v769_v60, %v765_v63  ;;  %v779_v8 = vadd.f32 %v777_v0, %v773_v56  ;;  %v795_v9 = vmul.f32 %v794_v5, %v2904_v6 }
 0x262   : > { %v791_v10 = vrot.slane %v789_v4, 1  ;;  %804 = sbr.rel (%p2086_p8) target bundleno = 632 (0x278), region = 72 }
 0x263   : > { %v785_v11 = vadd.f32 %v783_v2, %v779_v8  ;;  %v797_v12 = vrot.slane %v795_v9, 2 }
 0x264   : > { %v793_v13 = vadd.f32 %v791_v10, %v787_v3 }
 0x266   : > { %v799_v14 = vadd.f32 %v797_v12, %v793_v13 }
 0x267   : > { %v805_v15 = vsub.f32 %v729_v44, %v771_v7  ;;  %v807_v16 = vsub.f32 %v743_v48, %v785_v11  ;;  %v816_v25 = vld [vmem:[%s2762_s23] sm:$0x1] }
 0x268   : > { %v810_v17 = vsub.f32 %v757_v59, %v799_v14 }
 0x269   : > { %v806_v18 = vmul.f32 %v805_v15, %v805_v15  ;;  %v808_v19 = vmul.f32 %v807_v16, %v807_v16 }
 0x26a   : > { %v811_v20 = vmul.f32 %v810_v17, %v810_v17 }
 0x26b   : > { %v809_v21 = vadd.f32 %v808_v19, %v806_v18 }
 0x26d   : > { %v812_v22 = vadd.f32 %v811_v20, %v809_v21 }
 0x26f   : > { %v813_v23 = vmul.f32 0.5, %v812_v22 }
 0x271   : > { %v2087_v24 = vadd.f32 -0.01, %v813_v23 }
 0x273   : > { %v815_v26 = vmax.f32 %v2087_v24, 0.0 }
 0x275   : > { %v817_v27 = vadd.f32 %v816_v25, %v815_v26 }
 0x277   : > { %818 = vst [vmem:[%s2762_s23] sm:$0x1] %v817_v27 }
 0x278 PF: > { %p2088_p6 = scmp.eq.s32.totalorder %s2876_s24, 0 }
 0x27a   : > { %822 = sbr.rel (%p2088_p6) target bundleno = 1064 (0x428), region = 76 }
 0x27f   : > { %v823_v28 = vmul.f32 %v2904_v6, %v2904_v6  ;;  %v831_v29 = vmul.f32 2.0, %v771_v7  ;;  %v833_v30 = vmul.f32 2.0, %v785_v11  ;;  %v835_v31 = vmul.f32 2.0, %v799_v14  ;;  %838 = vst [vmem:[#allocation3] sm:$0x1] %v729_v44 }
 0x280   : > { %839 = vst [vmem:[#allocation3 + $0x1] sm:$0x1] %v743_v48  ;;  %840 = vst [vmem:[#allocation3 + $0x2] sm:$0x1] %v757_v59  ;;  %vm875_vm1 = vcmask 64512  }
 0x281   : > { %v825_v32 = vrot.slane %v823_v28, 1  ;;  %v828_v33 = vrot.slane %v823_v28, 2  ;;  %832 = vst [vmem:[#allocation2] sm:$0x1] %v831_v29  ;;  %834 = vst [vmem:[#allocation2 + $0x1] sm:$0x1] %v833_v30 }
 0x282   : > { %836 = vst [vmem:[#allocation2 + $0x2] sm:$0x1] %v835_v31  ;;  %v1094_v30 = vld [vmem:[%s2762_s23] sm:$0x1] }
 0x283   : > { %v827_v34 = vadd.f32 %v825_v32, %v823_v28 }
 0x285   : > { %v2957_v35 = vadd.f32 %v828_v33, %v827_v34 }
 0x287   : > { %837 = vst [vmem:[#allocation2 + $0x3] sm:$0x1] %v2957_v35  ;;  %v842_v36 = vld [vmem:[#allocation3] sm:$0xff] }
 0x288   : > { %2247 = vmatprep.subr.mxu0 %v842_v36  ;;  %2327 = vmatprep.subr.mxu1 %v842_v36 }
 0x289   : > { %2248 = vmatpush3.msra.mxu0 %v842_v36  ;;  %2328 = vmatpush3.msra.mxu1 %v842_v36 }
 0x28e   : > { %v841_v6 = vld [vmem:[#allocation2] sm:$0xff] }
 0x28f   : > { %843 = vxpose.xlu0.b32.start.end [1/1] (short) %v841_v6, 128 }
 0x30b   : > { %v859_v37 = vpop.trf.xlu0 }
 0x30c   : > { %2249 = vmatprep.mubr.msk.f32.mxu0 %vm875_vm1, %v859_v37 }
 0x30f   : > { %v860_v38 = vpop.trf.xlu0 }
 0x310   : > { %2250 = vmatmul.mubr.msk.f32.vlgmr.msra.gmra.mxu0 %vm875_vm1, %v860_v38 }
 0x313   : > { %v861_v39 = vpop.trf.xlu0 }
 0x314   : > { %2252 = vmatprep.mubr.msk.f32.mxu0 %vm875_vm1, %v861_v39 }
 0x317   : > { %v862_v40 = vpop.trf.xlu0 }
 0x318   : > { %2253 = vmatmul.mubr.msk.f32.gmra.mxu0 %vm875_vm1, %v862_v40 }
 0x31b   : > { %v863_v41 = vpop.trf.xlu0 }
 0x31c   : > { %2255 = vmatprep.mubr.msk.f32.mxu0 %vm875_vm1, %v863_v41 }
 0x31f   : > { %v864_v42 = vpop.trf.xlu0 }
 0x320   : > { %2256 = vmatmul.mubr.msk.f32.gmra.mxu0 %vm875_vm1, %v864_v42 }
 0x323   : > { %v865_v43 = vpop.trf.xlu0 }
 0x324   : > { %2258 = vmatprep.mubr.msk.f32.mxu0 %vm875_vm1, %v865_v43 }
 0x327   : > { %v866_v44 = vpop.trf.xlu0 }
 0x328   : > { %2259 = vmatmul.mubr.msk.f32.gmra.mxu0 %vm875_vm1, %v866_v44 }
 0x32b   : > { %v867_v45 = vpop.trf.xlu0 }
 0x32c   : > { %2261 = vmatprep.mubr.msk.f32.mxu1 %vm875_vm1, %v867_v45 }
 0x32f   : > { %v868_v46 = vpop.trf.xlu0 }
 0x330   : > { %2262 = vmatmul.mubr.msk.f32.vlgmr.msra.gmra.mxu1 %vm875_vm1, %v868_v46 }
 0x333   : > { %v869_v47 = vpop.trf.xlu0 }
 0x334   : > { %2264 = vmatprep.mubr.msk.f32.mxu1 %vm875_vm1, %v869_v47 }
 0x337   : > { %v870_v48 = vpop.trf.xlu0 }
 0x338   : > { %2265 = vmatmul.mubr.msk.f32.gmra.mxu1 %vm875_vm1, %v870_v48 }
 0x33b   : > { %v871_v49 = vpop.trf.xlu0 }
 0x33c   : > { %2267 = vmatprep.mubr.msk.f32.mxu1 %vm875_vm1, %v871_v49 }
 0x33f   : > { %v872_v50 = vpop.trf.xlu0 }
 0x340   : > { %2268 = vmatmul.mubr.msk.f32.gmra.mxu1 %vm875_vm1, %v872_v50 }
 0x343   : > { %v873_v51 = vpop.trf.xlu0 }
 0x344   : > { %2270 = vmatprep.mubr.msk.f32.mxu1 %vm875_vm1, %v873_v51 }
 0x347   : > { %v874_v52 = vpop.trf.xlu0 }
 0x348   : > { %2271 = vmatmul.mubr.msk.f32.gmra.mxu1 %vm875_vm1, %v874_v52 }
 0x3d0   : > { %v2251_v53 = vpop.f32.mrf.mxu0 }
 0x3d2   : > { %v990_v54 = vpop.f32.mrf.mxu0 }
 0x3d8   : > { %v2254_v55 = vpop.f32.mrf.mxu0 }
 0x3da   : > { %v1000_v57 = vpop.f32.mrf.mxu0 }
 0x3e0   : > { %v2257_v58 = vpop.f32.mrf.mxu0 }
 0x3e1   : > { %v1070_v4 = vmax.f32 %v2251_v53, %v2257_v58 }
 0x3e2   : > { %v1010_v61 = vpop.f32.mrf.mxu0 }
 0x3e3   : > { %v1069_v2 = vmax.f32 %v990_v54, %v1010_v61 }
 0x3e8   : > { %v2260_v62 = vpop.f32.mrf.mxu0 }
 0x3e9   : > { %v1072_v5 = vmax.f32 %v2254_v55, %v2260_v62 }
 0x3ea   : > { %v1020_v1 = vpop.f32.mrf.mxu0 }
 0x3eb   : > { %v1071_v7 = vmax.f32 %v1000_v57, %v1020_v1 }
 0x3f0   : > { %v2263_v56 = vpop.f32.mrf.mxu1 }
 0x3f1   : > { %v1074_v10 = vmax.f32 %v1070_v4, %v2263_v56 }
 0x3f2   : > { %v1030_v59 = vpop.f32.mrf.mxu1 }
 0x3f3   : > { %v1073_v8 = vmax.f32 %v1069_v2, %v1030_v59 }
 0x3f8   : > { %v2266_v60 = vpop.f32.mrf.mxu1 }
 0x3f9   : > { %v1076_v11 = vmax.f32 %v1072_v5, %v2266_v60 }
 0x3fa   : > { %v1040_v63 = vpop.f32.mrf.mxu1 }
 0x3fb   : > { %v1075_v12 = vmax.f32 %v1071_v7, %v1040_v63 }
 0x400   : > { %v2269_v0 = vpop.f32.mrf.mxu1 }
 0x401   : > { %v1078_v15 = vmax.f32 %v1074_v10, %v2269_v0 }
 0x402   : > { %v1050_v3 = vpop.f32.mrf.mxu1 }
 0x403   : > { %v1077_v13 = vmax.f32 %v1073_v8, %v1050_v3 }
 0x405   : > { %v1081_v18 = vmax.f32 %v1077_v13, %v1078_v15 }
 0x408   : > { %v2272_v9 = vpop.f32.mrf.mxu1 }
 0x409   : > { %v1080_v16 = vmax.f32 %v1076_v11, %v2272_v9 }
 0x40a   : > { %v1060_v14 = vpop.f32.mrf.mxu1 }
 0x40b   : > { %v1079_v17 = vmax.f32 %v1075_v12, %v1060_v14 }
 0x40d   : > { %v1082_v19 = vmax.f32 %v1079_v17, %v1080_v16 }
 0x40f   : > { %v1083_v20 = vmax.f32 %v1081_v18, %v1082_v19 }
 0x411   : > { %v1084_v21 = vrot.slane %v1083_v20, 4 }
 0x413   : > { %v1085_v22 = vmax.f32 %v1083_v20, %v1084_v21 }
 0x415   : > { %v1086_v23 = vrot.slane %v1085_v22, 2 }
 0x417   : > { %v1087_v24 = vmax.f32 %v1085_v22, %v1086_v23 }
 0x419   : > { %v1088_v25 = vrot.slane %v1087_v24, 1 }
 0x41b   : > { %v1089_v26 = vmax.f32 %v1087_v24, %v1088_v25 }
 0x41d   : > { %v1090_v27 = vsub.f32 %v2957_v35, %v1089_v26 }
 0x41f   : > { %v1091_v28 = vmul.f32 0.5, %v1090_v27 }
 0x421   : > { %v2105_v29 = vadd.f32 -0.01, %v1091_v28 }
 0x423   : > { %v1093_v31 = vmax.f32 %v2105_v29, 0.0 }
 0x425   : > { %v1095_v32 = vadd.f32 %v1094_v30, %v1093_v31 }
 0x427   : > { %1096 = vst [vmem:[%s2762_s23] sm:$0x1] %v1095_v32 }
 0x428 PF: > { %s1097_s4 = sadd.s32 2, %s2758_s12 }
 0x429   : > { %p2106_p11 = scmp.ge.s32.totalorder %s1097_s4, 6 }
 0x42a   : > { %s1102_s24 = sld [smem:[#allocation4 + %s1097_s4]] (!%p2106_p11)  ;;  %s2980_s14 = smul.u32 (!%p2106_p11), 9, %s1097_s4 }
 0x42b   : > { %1101 = sbr.rel (%p2106_p11) target bundleno = 1547 (0x60b), region = 80  ;;  %s2982_s16 = sld [smem:[#allocation12 + %s1097_s4]] (!%p2106_p11) }
 0x42c   : > { %s1104_s17 = sld [smem:[#allocation9 + %s2980_s14]] (!%p2106_p11)  ;;  %s1105_s15 = sadd.s32 (!%p2106_p11), 1, %s2980_s14 }
 0x42d   : > { %s1106_s6 = sld [smem:[#allocation9 + %s1105_s15]] (!%p2106_p11)  ;;  %s1107_s20 = sadd.s32 (!%p2106_p11), 2, %s2980_s14 }
 0x42e   : > { %s1108_s7 = sld [smem:[#allocation9 + %s1107_s20]] (!%p2106_p11)  ;;  %s1109_s8 = sadd.s32 (!%p2106_p11), 3, %s2980_s14 }
 0x42f   : > { %s1110_s30 = sld [smem:[#allocation9 + %s1109_s8]] (!%p2106_p11)  ;;  %s1111_s1 = sadd.s32 (!%p2106_p11), 4, %s2980_s14 }
 0x430   : > { %s1112_s9 = sld [smem:[#allocation9 + %s1111_s1]]  ;;  %s3243_s3 = sadd.s32 5, %s2980_s14 }
 0x431   : > { %s1114_s0 = sld [smem:[#allocation9 + %s3243_s3]]  ;;  %s1115_s2 = sadd.s32 6, %s2980_s14 }
 0x432   : > { %s1116_s27 = sld [smem:[#allocation9 + %s1115_s2]]  ;;  %s3244_s29 = sadd.s32 7, %s2980_s14  ;;  %v1133_v33 = vstv %s1104_s17 }
 0x433   : > { %s2998_s25 = sld [smem:[#allocation9 + %s3244_s29]]  ;;  %s1119_s26 = sadd.s32 8, %s2980_s14  ;;  %v1135_v34 = vstv %s1106_s6 }
 0x434   : > { %s3003_s10 = sld [smem:[#allocation9 + %s1119_s26]]  ;;  %s2107_s11 = sshll.u32 %s1102_s24, 3  ;;  %v1141_v35 = vstv %s1108_s7 }
 0x435   : > { %s3006_s13 = sld [smem:[#allocation10 + %s2980_s14]]  ;;  %v1147_v36 = vstv %s1110_s30  ;;  %s1131_s3 = scalar_lea.vmem [#allocation13], %s2107_s11 }
 0x436   : > { %s3008_s4 = sld [smem:[#allocation10 + %s1105_s15]]  ;;  %v3010_v6 = vld [vmem:[%s1131_s3] sm:$0xff]  ;;  %v1149_v37 = vstv %s1112_s9  ;;  %s3276_s15 = sadd.s32 5, %s2980_s14 }
 0x437   : > { %s3012_s29 = sld [smem:[#allocation10 + %s1107_s20]]  ;;  %v1134_v38 = vmul.f32 %v1133_v33, %v3010_v6  ;;  %v1136_v39 = vmul.f32 %v1135_v34, %v3010_v6  ;;  %v1142_v40 = vmul.f32 %v1141_v35, %v3010_v6  ;;  %v1148_v41 = vmul.f32 %v1147_v36, %v3010_v6  ;;  %s3277_s7 = sadd.s32 7, %s2980_s14 }
 0x438   : > { %s3017_s24 = sld [smem:[#allocation10 + %s1109_s8]]  ;;  %v1150_v42 = vmul.f32 %v1149_v37, %v3010_v6  ;;  %v1155_v43 = vstv %s1114_s0  ;;  %v1161_v44 = vstv %s1116_s27  ;;  %p2108_p13 = scmp.ne.s32.totalorder %s2982_s16, 0 }
 0x439   : > { %s3021_s17 = sld [smem:[#allocation10 + %s1111_s1]]  ;;  %v1138_v45 = vrot.slane %v1136_v39, 1  ;;  %v1144_v46 = vrot.slane %v1142_v40, 2  ;;  %v1156_v47 = vmul.f32 %v1155_v43, %v3010_v6  ;;  %v1162_v49 = vmul.f32 %v1161_v44, %v3010_v6 }
 0x43a   : > { %s3026_s6 = sld [smem:[#allocation10 + %s3276_s15]]  ;;  %v1152_v48 = vrot.slane %v1150_v42, 1  ;;  %v1163_v50 = vstv %s2998_s25  ;;  %v1169_v51 = vstv %s3003_s10 }
 0x43b   : > { %s3033_s20 = sld [smem:[#allocation10 + %s1115_s2]]  ;;  %v1140_v52 = vadd.f32 %v1138_v45, %v1134_v38  ;;  %v1158_v53 = vrot.slane %v1156_v47, 2  ;;  %v1164_v54 = vmul.f32 %v1163_v50, %v3010_v6  ;;  %v1170_v55 = vmul.f32 %v1169_v51, %v3010_v6 }
 0x43c   : > { %s1128_s8 = sld [smem:[#allocation10 + %s3277_s7]]  ;;  %v1154_v56 = vadd.f32 %v1152_v48, %v1148_v41  ;;  %v1175_v57 = vstv %s3006_s13  ;;  %v1177_v58 = vstv %s3008_s4 }
 0x43d   : > { %s1129_s30 = sld [smem:[#allocation10 + %s1119_s26]]  ;;  %v1146_v59 = vadd.f32 %v1144_v46, %v1140_v52  ;;  %v1166_v60 = vrot.slane %v1164_v54, 1  ;;  %v1172_v61 = vrot.slane %v1170_v55, 2  ;;  %v1176_v62 = vmul.f32 %v1175_v57, %v3010_v6 }
 0x43e   : > { %v1160_v63 = vadd.f32 %v1158_v53, %v1154_v56  ;;  %v1178_v0 = vmul.f32 %v1177_v58, %v3010_v6  ;;  %v1183_v1 = vstv %s3012_s29  ;;  %v1189_v2 = vstv %s3017_s24 }
 0x43f   : > { %v1168_v3 = vadd.f32 %v1166_v60, %v1162_v49  ;;  %v1184_v4 = vmul.f32 %v1183_v1, %v3010_v6  ;;  %v1191_v5 = vstv %s3021_s17  ;;  %v1190_v8 = vmul.f32 %v1189_v2, %v3010_v6 }
 0x440   : > { %v1180_v7 = vrot.slane %v1178_v0, 1  ;;  %v1192_v9 = vmul.f32 %v1191_v5, %v3010_v6  ;;  %v1197_v10 = vstv %s3026_s6 }
 0x441   : > { %v1174_v11 = vadd.f32 %v1172_v61, %v1168_v3  ;;  %v1186_v12 = vrot.slane %v1184_v4, 2  ;;  %v1198_v13 = vmul.f32 %v1197_v10, %v3010_v6  ;;  %v1203_v14 = vstv %s3033_s20 }
 0x442   : > { %v1182_v15 = vadd.f32 %v1180_v7, %v1176_v62  ;;  %v1194_v16 = vrot.slane %v1192_v9, 1  ;;  %v1205_v17 = vstv %s1128_s8  ;;  %v1204_v19 = vmul.f32 %v1203_v14, %v3010_v6 }
 0x443   : > { %v1200_v18 = vrot.slane %v1198_v13, 2  ;;  %v1206_v20 = vmul.f32 %v1205_v17, %v3010_v6  ;;  %v1211_v21 = vstv %s1129_s30 }
 0x444   : > { %v1188_v22 = vadd.f32 %v1186_v12, %v1182_v15  ;;  %v1196_v23 = vadd.f32 %v1194_v16, %v1190_v8  ;;  %v1212_v24 = vmul.f32 %v1211_v21, %v3010_v6 }
 0x445   : > { %v1208_v25 = vrot.slane %v1206_v20, 1  ;;  %1221 = sbr.rel (%p2108_p13) target bundleno = 1115 (0x45b), region = 84 }
 0x446   : > { %v1202_v26 = vadd.f32 %v1200_v18, %v1196_v23  ;;  %v1214_v27 = vrot.slane %v1212_v24, 2 }
 0x447   : > { %v1210_v28 = vadd.f32 %v1208_v25, %v1204_v19 }
 0x449   : > { %v1216_v29 = vadd.f32 %v1214_v27, %v1210_v28 }
 0x44a   : > { %v1222_v30 = vsub.f32 %v1146_v59, %v1188_v22  ;;  %v1224_v31 = vsub.f32 %v1160_v63, %v1202_v26  ;;  %v1233_v40 = vld [vmem:[%s2762_s23] sm:$0x1] }
 0x44b   : > { %v1227_v32 = vsub.f32 %v1174_v11, %v1216_v29 }
 0x44c   : > { %v1223_v33 = vmul.f32 %v1222_v30, %v1222_v30  ;;  %v1225_v34 = vmul.f32 %v1224_v31, %v1224_v31 }
 0x44d   : > { %v1228_v35 = vmul.f32 %v1227_v32, %v1227_v32 }
 0x44e   : > { %v1226_v36 = vadd.f32 %v1225_v34, %v1223_v33 }
 0x450   : > { %v1229_v37 = vadd.f32 %v1228_v35, %v1226_v36 }
 0x452   : > { %v1230_v38 = vmul.f32 0.5, %v1229_v37 }
 0x454   : > { %v2109_v39 = vadd.f32 -0.01, %v1230_v38 }
 0x456   : > { %v1232_v41 = vmax.f32 %v2109_v39, 0.0 }
 0x458   : > { %v1234_v42 = vadd.f32 %v1233_v40, %v1232_v41 }
 0x45a   : > { %1235 = vst [vmem:[%s2762_s23] sm:$0x1] %v1234_v42 }
 0x45b PF: > { %p2110_p0 = scmp.eq.s32.totalorder %s2982_s16, 0 }
 0x45d   : > { %1239 = sbr.rel (%p2110_p0) target bundleno = 1547 (0x60b), region = 88 }
 0x462   : > { %v1240_v43 = vmul.f32 %v3010_v6, %v3010_v6  ;;  %v1248_v44 = vmul.f32 2.0, %v1188_v22  ;;  %v1250_v45 = vmul.f32 2.0, %v1202_v26  ;;  %v1252_v46 = vmul.f32 2.0, %v1216_v29  ;;  %1255 = vst [vmem:[#allocation3] sm:$0x1] %v1146_v59 }
 0x463   : > { %1256 = vst [vmem:[#allocation3 + $0x1] sm:$0x1] %v1160_v63  ;;  %1257 = vst [vmem:[#allocation3 + $0x2] sm:$0x1] %v1174_v11  ;;  %vm1292_vm2 = vcmask 64512  }
 0x464   : > { %v1242_v47 = vrot.slane %v1240_v43, 1  ;;  %v1245_v48 = vrot.slane %v1240_v43, 2  ;;  %1249 = vst [vmem:[#allocation2] sm:$0x1] %v1248_v44  ;;  %1251 = vst [vmem:[#allocation2 + $0x1] sm:$0x1] %v1250_v45 }
 0x465   : > { %1253 = vst [vmem:[#allocation2 + $0x2] sm:$0x1] %v1252_v46  ;;  %v1511_v45 = vld [vmem:[%s2762_s23] sm:$0x1] }
 0x466   : > { %v1244_v49 = vadd.f32 %v1242_v47, %v1240_v43 }
 0x468   : > { %v3063_v50 = vadd.f32 %v1245_v48, %v1244_v49 }
 0x46a   : > { %1254 = vst [vmem:[#allocation2 + $0x3] sm:$0x1] %v3063_v50  ;;  %v1259_v51 = vld [vmem:[#allocation3] sm:$0xff] }
 0x46b   : > { %2273 = vmatprep.subr.mxu0 %v1259_v51  ;;  %2329 = vmatprep.subr.mxu1 %v1259_v51 }
 0x46c   : > { %2274 = vmatpush3.msra.mxu0 %v1259_v51  ;;  %2330 = vmatpush3.msra.mxu1 %v1259_v51 }
 0x471   : > { %v1258_v6 = vld [vmem:[#allocation2] sm:$0xff] }
 0x472   : > { %1260 = vxpose.xlu0.b32.start.end [1/1] (short) %v1258_v6, 128 }
 0x4ee   : > { %v1276_v52 = vpop.trf.xlu0 }
 0x4ef   : > { %2275 = vmatprep.mubr.msk.f32.mxu0 %vm1292_vm2, %v1276_v52 }
 0x4f2   : > { %v1277_v53 = vpop.trf.xlu0 }
 0x4f3   : > { %2276 = vmatmul.mubr.msk.f32.vlgmr.msra.gmra.mxu0 %vm1292_vm2, %v1277_v53 }
 0x4f6   : > { %v1278_v54 = vpop.trf.xlu0 }
 0x4f7   : > { %2278 = vmatprep.mubr.msk.f32.mxu0 %vm1292_vm2, %v1278_v54 }
 0x4fa   : > { %v1279_v55 = vpop.trf.xlu0 }
 0x4fb   : > { %2279 = vmatmul.mubr.msk.f32.gmra.mxu0 %vm1292_vm2, %v1279_v55 }
 0x4fe   : > { %v1280_v56 = vpop.trf.xlu0 }
 0x4ff   : > { %2281 = vmatprep.mubr.msk.f32.mxu0 %vm1292_vm2, %v1280_v56 }
 0x502   : > { %v1281_v57 = vpop.trf.xlu0 }
 0x503   : > { %2282 = vmatmul.mubr.msk.f32.gmra.mxu0 %vm1292_vm2, %v1281_v57 }
 0x506   : > { %v1282_v58 = vpop.trf.xlu0 }
 0x507   : > { %2284 = vmatprep.mubr.msk.f32.mxu0 %vm1292_vm2, %v1282_v58 }
 0x50a   : > { %v1283_v59 = vpop.trf.xlu0 }
 0x50b   : > { %2285 = vmatmul.mubr.msk.f32.gmra.mxu0 %vm1292_vm2, %v1283_v59 }
 0x50e   : > { %v1284_v60 = vpop.trf.xlu0 }
 0x50f   : > { %2287 = vmatprep.mubr.msk.f32.mxu1 %vm1292_vm2, %v1284_v60 }
 0x512   : > { %v1285_v61 = vpop.trf.xlu0 }
 0x513   : > { %2288 = vmatmul.mubr.msk.f32.vlgmr.msra.gmra.mxu1 %vm1292_vm2, %v1285_v61 }
 0x516   : > { %v1286_v62 = vpop.trf.xlu0 }
 0x517   : > { %2290 = vmatprep.mubr.msk.f32.mxu1 %vm1292_vm2, %v1286_v62 }
 0x51a   : > { %v1287_v63 = vpop.trf.xlu0 }
 0x51b   : > { %2291 = vmatmul.mubr.msk.f32.gmra.mxu1 %vm1292_vm2, %v1287_v63 }
 0x51e   : > { %v1288_v0 = vpop.trf.xlu0 }
 0x51f   : > { %2293 = vmatprep.mubr.msk.f32.mxu1 %vm1292_vm2, %v1288_v0 }
 0x522   : > { %v1289_v1 = vpop.trf.xlu0 }
 0x523   : > { %2294 = vmatmul.mubr.msk.f32.gmra.mxu1 %vm1292_vm2, %v1289_v1 }
 0x526   : > { %v1290_v2 = vpop.trf.xlu0 }
 0x527   : > { %2296 = vmatprep.mubr.msk.f32.mxu1 %vm1292_vm2, %v1290_v2 }
 0x52a   : > { %v1291_v3 = vpop.trf.xlu0 }
 0x52b   : > { %2297 = vmatmul.mubr.msk.f32.gmra.mxu1 %vm1292_vm2, %v1291_v3 }
 0x5b3   : > { %v2277_v4 = vpop.f32.mrf.mxu0 }
 0x5b5   : > { %v1407_v5 = vpop.f32.mrf.mxu0 }
 0x5bb   : > { %v2280_v7 = vpop.f32.mrf.mxu0 }
 0x5bd   : > { %v1417_v9 = vpop.f32.mrf.mxu0 }
 0x5c3   : > { %v2283_v10 = vpop.f32.mrf.mxu0 }
 0x5c4   : > { %v1487_v20 = vmax.f32 %v2277_v4, %v2283_v10 }
 0x5c5   : > { %v1427_v13 = vpop.f32.mrf.mxu0 }
 0x5c6   : > { %v1486_v18 = vmax.f32 %v1407_v5, %v1427_v13 }
 0x5cb   : > { %v2286_v14 = vpop.f32.mrf.mxu0 }
 0x5cc   : > { %v1489_v21 = vmax.f32 %v2280_v7, %v2286_v14 }
 0x5cd   : > { %v1437_v17 = vpop.f32.mrf.mxu0 }
 0x5ce   : > { %v1488_v22 = vmax.f32 %v1417_v9, %v1437_v17 }
 0x5d3   : > { %v2289_v8 = vpop.f32.mrf.mxu1 }
 0x5d4   : > { %v1491_v25 = vmax.f32 %v1487_v20, %v2289_v8 }
 0x5d5   : > { %v1447_v11 = vpop.f32.mrf.mxu1 }
 0x5d6   : > { %v1490_v23 = vmax.f32 %v1486_v18, %v1447_v11 }
 0x5db   : > { %v2292_v12 = vpop.f32.mrf.mxu1 }
 0x5dc   : > { %v1493_v26 = vmax.f32 %v1489_v21, %v2292_v12 }
 0x5dd   : > { %v1457_v15 = vpop.f32.mrf.mxu1 }
 0x5de   : > { %v1492_v27 = vmax.f32 %v1488_v22, %v1457_v15 }
 0x5e3   : > { %v2295_v16 = vpop.f32.mrf.mxu1 }
 0x5e4   : > { %v1495_v30 = vmax.f32 %v1491_v25, %v2295_v16 }
 0x5e5   : > { %v1467_v19 = vpop.f32.mrf.mxu1 }
 0x5e6   : > { %v1494_v28 = vmax.f32 %v1490_v23, %v1467_v19 }
 0x5e8   : > { %v1498_v33 = vmax.f32 %v1494_v28, %v1495_v30 }
 0x5eb   : > { %v2298_v24 = vpop.f32.mrf.mxu1 }
 0x5ec   : > { %v1497_v31 = vmax.f32 %v1493_v26, %v2298_v24 }
 0x5ed   : > { %v1477_v29 = vpop.f32.mrf.mxu1 }
 0x5ee   : > { %v1496_v32 = vmax.f32 %v1492_v27, %v1477_v29 }
 0x5f0   : > { %v1499_v34 = vmax.f32 %v1496_v32, %v1497_v31 }
 0x5f2   : > { %v1500_v35 = vmax.f32 %v1498_v33, %v1499_v34 }
 0x5f4   : > { %v1501_v36 = vrot.slane %v1500_v35, 4 }
 0x5f6   : > { %v1502_v37 = vmax.f32 %v1500_v35, %v1501_v36 }
 0x5f8   : > { %v1503_v38 = vrot.slane %v1502_v37, 2 }
 0x5fa   : > { %v1504_v39 = vmax.f32 %v1502_v37, %v1503_v38 }
 0x5fc   : > { %v1505_v40 = vrot.slane %v1504_v39, 1 }
 0x5fe   : > { %v1506_v41 = vmax.f32 %v1504_v39, %v1505_v40 }
 0x600   : > { %v1507_v42 = vsub.f32 %v3063_v50, %v1506_v41 }
 0x602   : > { %v1508_v43 = vmul.f32 0.5, %v1507_v42 }
 0x604   : > { %v2127_v44 = vadd.f32 -0.01, %v1508_v43 }
 0x606   : > { %v1510_v46 = vmax.f32 %v2127_v44, 0.0 }
 0x608   : > { %v1512_v47 = vadd.f32 %v1511_v45, %v1510_v46 }
 0x60a   : > { %1513 = vst [vmem:[%s2762_s23] sm:$0x1] %v1512_v47 }
 0x60b PF: > { %s1514_s14 = sadd.s32 3, %s2758_s12 }
 0x60c   : > { %p2128_p2 = scmp.ge.s32.totalorder %s1514_s14, 6 }
 0x60d   : > { %s1519_s16 = sld [smem:[#allocation4 + %s1514_s14]] (!%p2128_p2)  ;;  %s3086_s1 = smul.u32 (!%p2128_p2), 9, %s1514_s14 }
 0x60e   : > { %1518 = sbr.rel (%p2128_p2) target bundleno = 2030 (0x7ee), region = 92  ;;  %s3088_s9 = sld [smem:[#allocation12 + %s1514_s14]] (!%p2128_p2) }
 0x60f   : > { %s1521_s12 = sld [smem:[#allocation9 + %s3086_s1]] (!%p2128_p2)  ;;  %s1522_s3 = sadd.s32 (!%p2128_p2), 1, %s3086_s1 }
 0x610   : > { %s1523_s0 = sld [smem:[#allocation9 + %s1522_s3]] (!%p2128_p2)  ;;  %s1524_s2 = sadd.s32 (!%p2128_p2), 2, %s3086_s1 }
 0x611   : > { %s1525_s27 = sld [smem:[#allocation9 + %s1524_s2]] (!%p2128_p2)  ;;  %s1526_s29 = sadd.s32 (!%p2128_p2), 3, %s3086_s1 }
 0x612   : > { %s1527_s25 = sld [smem:[#allocation9 + %s1526_s29]] (!%p2128_p2)  ;;  %s1528_s26 = sadd.s32 (!%p2128_p2), 4, %s3086_s1 }
 0x613   : > { %s1529_s10 = sld [smem:[#allocation9 + %s1528_s26]]  ;;  %s1530_s11 = sadd.s32 5, %s3086_s1 }
 0x614   : > { %s1531_s13 = sld [smem:[#allocation9 + %s1530_s11]]  ;;  %s1532_s4 = sadd.s32 6, %s3086_s1 }
 0x615   : > { %s1533_s24 = sld [smem:[#allocation9 + %s1532_s4]]  ;;  %s3245_s17 = sadd.s32 7, %s3086_s1  ;;  %v1550_v48 = vstv %s1521_s12 }
 0x616   : > { %s3104_s15 = sld [smem:[#allocation9 + %s3245_s17]]  ;;  %s1536_s6 = sadd.s32 8, %s3086_s1  ;;  %v1552_v49 = vstv %s1523_s0 }
 0x617   : > { %s3109_s20 = sld [smem:[#allocation9 + %s1536_s6]]  ;;  %s2129_s7 = sshll.u32 %s1519_s16, 3  ;;  %v1558_v50 = vstv %s1525_s27 }
 0x618   : > { %s3112_s8 = sld [smem:[#allocation10 + %s3086_s1]]  ;;  %v1564_v51 = vstv %s1527_s25  ;;  %s1548_s14 = scalar_lea.vmem [#allocation13], %s2129_s7 }
 0x619   : > { %s3114_s30 = sld [smem:[#allocation10 + %s1522_s3]]  ;;  %v3116_v6 = vld [vmem:[%s1548_s14] sm:$0xff]  ;;  %v1566_v52 = vstv %s1529_s10  ;;  %p2130_p1 = scmp.ne.s32.totalorder %s3088_s9, 0 }
 0x61a   : > { %s3118_s17 = sld [smem:[#allocation10 + %s1524_s2]]  ;;  %v1551_v53 = vmul.f32 %v1550_v48, %v3116_v6  ;;  %v1553_v54 = vmul.f32 %v1552_v49, %v3116_v6  ;;  %v1559_v55 = vmul.f32 %v1558_v50, %v3116_v6  ;;  %v1565_v56 = vmul.f32 %v1564_v51, %v3116_v6  ;;  %s3278_s2 = sadd.s32 7, %s3086_s1 }
 0x61b   : > { %s3123_s16 = sld [smem:[#allocation10 + %s1526_s29]]  ;;  %v1567_v57 = vmul.f32 %v1566_v52, %v3116_v6  ;;  %v1572_v58 = vstv %s1531_s13  ;;  %v1578_v59 = vstv %s1533_s24 }
 0x61c   : > { %s3127_s12 = sld [smem:[#allocation10 + %s1528_s26]]  ;;  %v1555_v60 = vrot.slane %v1553_v54, 1  ;;  %v1561_v61 = vrot.slane %v1559_v55, 2  ;;  %v1573_v62 = vmul.f32 %v1572_v58, %v3116_v6  ;;  %v1579_v0 = vmul.f32 %v1578_v59, %v3116_v6 }
 0x61d   : > { %s3132_s3 = sld [smem:[#allocation10 + %s1530_s11]]  ;;  %v1569_v63 = vrot.slane %v1567_v57, 1  ;;  %v1580_v1 = vstv %s3104_s15  ;;  %v1586_v2 = vstv %s3109_s20 }
 0x61e   : > { %s3139_s0 = sld [smem:[#allocation10 + %s1532_s4]]  ;;  %v1557_v3 = vadd.f32 %v1555_v60, %v1551_v53  ;;  %v1575_v4 = vrot.slane %v1573_v62, 2  ;;  %v1581_v5 = vmul.f32 %v1580_v1, %v3116_v6  ;;  %v1587_v7 = vmul.f32 %v1586_v2, %v3116_v6 }
 0x61f   : > { %s1545_s27 = sld [smem:[#allocation10 + %s3278_s2]]  ;;  %v1571_v8 = vadd.f32 %v1569_v63, %v1565_v56  ;;  %v1592_v9 = vstv %s3112_s8  ;;  %v1594_v10 = vstv %s3114_s30 }
 0x620   : > { %s1546_s29 = sld [smem:[#allocation10 + %s1536_s6]]  ;;  %v1563_v11 = vadd.f32 %v1561_v61, %v1557_v3  ;;  %v1583_v12 = vrot.slane %v1581_v5, 1  ;;  %v1589_v13 = vrot.slane %v1587_v7, 2  ;;  %v1593_v14 = vmul.f32 %v1592_v9, %v3116_v6 }
 0x621   : > { %v1577_v15 = vadd.f32 %v1575_v4, %v1571_v8  ;;  %v1595_v16 = vmul.f32 %v1594_v10, %v3116_v6  ;;  %v1600_v17 = vstv %s3118_s17  ;;  %v1606_v18 = vstv %s3123_s16 }
 0x622   : > { %v1585_v19 = vadd.f32 %v1583_v12, %v1579_v0  ;;  %v1601_v20 = vmul.f32 %v1600_v17, %v3116_v6  ;;  %v1608_v21 = vstv %s3127_s12  ;;  %v1607_v23 = vmul.f32 %v1606_v18, %v3116_v6 }
 0x623   : > { %v1597_v22 = vrot.slane %v1595_v16, 1  ;;  %v1609_v24 = vmul.f32 %v1608_v21, %v3116_v6  ;;  %v1614_v25 = vstv %s3132_s3 }
 0x624   : > { %v1591_v26 = vadd.f32 %v1589_v13, %v1585_v19  ;;  %v1603_v27 = vrot.slane %v1601_v20, 2  ;;  %v1615_v28 = vmul.f32 %v1614_v25, %v3116_v6  ;;  %v1620_v29 = vstv %s3139_s0 }
 0x625   : > { %v1599_v30 = vadd.f32 %v1597_v22, %v1593_v14  ;;  %v1611_v31 = vrot.slane %v1609_v24, 1  ;;  %v1622_v32 = vstv %s1545_s27  ;;  %v1621_v34 = vmul.f32 %v1620_v29, %v3116_v6 }
 0x626   : > { %v1617_v33 = vrot.slane %v1615_v28, 2  ;;  %v1623_v35 = vmul.f32 %v1622_v32, %v3116_v6  ;;  %v1628_v36 = vstv %s1546_s29 }
 0x627   : > { %v1605_v37 = vadd.f32 %v1603_v27, %v1599_v30  ;;  %v1613_v38 = vadd.f32 %v1611_v31, %v1607_v23  ;;  %v1629_v39 = vmul.f32 %v1628_v36, %v3116_v6 }
 0x628   : > { %v1625_v40 = vrot.slane %v1623_v35, 1  ;;  %1638 = sbr.rel (%p2130_p1) target bundleno = 1598 (0x63e), region = 96 }
 0x629   : > { %v1619_v41 = vadd.f32 %v1617_v33, %v1613_v38  ;;  %v1631_v42 = vrot.slane %v1629_v39, 2 }
 0x62a   : > { %v1627_v43 = vadd.f32 %v1625_v40, %v1621_v34 }
 0x62c   : > { %v1633_v44 = vadd.f32 %v1631_v42, %v1627_v43 }
 0x62d   : > { %v1639_v45 = vsub.f32 %v1563_v11, %v1605_v37  ;;  %v1641_v46 = vsub.f32 %v1577_v15, %v1619_v41  ;;  %v1650_v55 = vld [vmem:[%s2762_s23] sm:$0x1] }
 0x62e   : > { %v1644_v47 = vsub.f32 %v1591_v26, %v1633_v44 }
 0x62f   : > { %v1640_v48 = vmul.f32 %v1639_v45, %v1639_v45  ;;  %v1642_v49 = vmul.f32 %v1641_v46, %v1641_v46 }
 0x630   : > { %v1645_v50 = vmul.f32 %v1644_v47, %v1644_v47 }
 0x631   : > { %v1643_v51 = vadd.f32 %v1642_v49, %v1640_v48 }
 0x633   : > { %v1646_v52 = vadd.f32 %v1645_v50, %v1643_v51 }
 0x635   : > { %v1647_v53 = vmul.f32 0.5, %v1646_v52 }
 0x637   : > { %v2131_v54 = vadd.f32 -0.01, %v1647_v53 }
 0x639   : > { %v1649_v56 = vmax.f32 %v2131_v54, 0.0 }
 0x63b   : > { %v1651_v57 = vadd.f32 %v1650_v55, %v1649_v56 }
 0x63d   : > { %1652 = vst [vmem:[%s2762_s23] sm:$0x1] %v1651_v57 }
 0x63e PF: > { %p2132_p3 = scmp.eq.s32.totalorder %s3088_s9, 0 }
 0x640   : > { %1656 = sbr.rel (%p2132_p3) target bundleno = 2030 (0x7ee), region = 100 }
 0x645   : > { %v1657_v58 = vmul.f32 %v3116_v6, %v3116_v6  ;;  %v1665_v59 = vmul.f32 2.0, %v1605_v37  ;;  %v1667_v60 = vmul.f32 2.0, %v1619_v41  ;;  %v1669_v61 = vmul.f32 2.0, %v1633_v44  ;;  %1672 = vst [vmem:[#allocation3] sm:$0x1] %v1563_v11 }
 0x646   : > { %1673 = vst [vmem:[#allocation3 + $0x1] sm:$0x1] %v1577_v15  ;;  %1674 = vst [vmem:[#allocation3 + $0x2] sm:$0x1] %v1591_v26  ;;  %vm1709_vm3 = vcmask 64512  }
 0x647   : > { %v1659_v62 = vrot.slane %v1657_v58, 1  ;;  %v1662_v63 = vrot.slane %v1657_v58, 2  ;;  %1666 = vst [vmem:[#allocation2] sm:$0x1] %v1665_v59  ;;  %1668 = vst [vmem:[#allocation2 + $0x1] sm:$0x1] %v1667_v60 }
 0x648   : > { %1670 = vst [vmem:[#allocation2 + $0x2] sm:$0x1] %v1669_v61  ;;  %v1928_v60 = vld [vmem:[%s2762_s23] sm:$0x1] }
 0x649   : > { %v1661_v0 = vadd.f32 %v1659_v62, %v1657_v58 }
 0x64b   : > { %v3169_v1 = vadd.f32 %v1662_v63, %v1661_v0 }
 0x64d   : > { %1671 = vst [vmem:[#allocation2 + $0x3] sm:$0x1] %v3169_v1  ;;  %v1676_v2 = vld [vmem:[#allocation3] sm:$0xff] }
 0x64e   : > { %2299 = vmatprep.subr.mxu0 %v1676_v2  ;;  %2331 = vmatprep.subr.mxu1 %v1676_v2 }
 0x64f   : > { %2300 = vmatpush3.msra.mxu0 %v1676_v2  ;;  %2332 = vmatpush3.msra.mxu1 %v1676_v2 }
 0x654   : > { %v1675_v6 = vld [vmem:[#allocation2] sm:$0xff] }
 0x655   : > { %1677 = vxpose.xlu0.b32.start.end [1/1] (short) %v1675_v6, 128 }
 0x6d1   : > { %v1693_v3 = vpop.trf.xlu0 }
 0x6d2   : > { %2301 = vmatprep.mubr.msk.f32.mxu0 %vm1709_vm3, %v1693_v3 }
 0x6d5   : > { %v1694_v4 = vpop.trf.xlu0 }
 0x6d6   : > { %2302 = vmatmul.mubr.msk.f32.vlgmr.msra.gmra.mxu0 %vm1709_vm3, %v1694_v4 }
 0x6d9   : > { %v1695_v5 = vpop.trf.xlu0 }
 0x6da   : > { %2304 = vmatprep.mubr.msk.f32.mxu0 %vm1709_vm3, %v1695_v5 }
 0x6dd   : > { %v1696_v7 = vpop.trf.xlu0 }
 0x6de   : > { %2305 = vmatmul.mubr.msk.f32.gmra.mxu0 %vm1709_vm3, %v1696_v7 }
 0x6e1   : > { %v1697_v8 = vpop.trf.xlu0 }
 0x6e2   : > { %2307 = vmatprep.mubr.msk.f32.mxu0 %vm1709_vm3, %v1697_v8 }
 0x6e5   : > { %v1698_v9 = vpop.trf.xlu0 }
 0x6e6   : > { %2308 = vmatmul.mubr.msk.f32.gmra.mxu0 %vm1709_vm3, %v1698_v9 }
 0x6e9   : > { %v1699_v10 = vpop.trf.xlu0 }
 0x6ea   : > { %2310 = vmatprep.mubr.msk.f32.mxu0 %vm1709_vm3, %v1699_v10 }
 0x6ed   : > { %v1700_v11 = vpop.trf.xlu0 }
 0x6ee   : > { %2311 = vmatmul.mubr.msk.f32.gmra.mxu0 %vm1709_vm3, %v1700_v11 }
 0x6f1   : > { %v1701_v12 = vpop.trf.xlu0 }
 0x6f2   : > { %2313 = vmatprep.mubr.msk.f32.mxu1 %vm1709_vm3, %v1701_v12 }
 0x6f5   : > { %v1702_v13 = vpop.trf.xlu0 }
 0x6f6   : > { %2314 = vmatmul.mubr.msk.f32.vlgmr.msra.gmra.mxu1 %vm1709_vm3, %v1702_v13 }
 0x6f9   : > { %v1703_v14 = vpop.trf.xlu0 }
 0x6fa   : > { %2316 = vmatprep.mubr.msk.f32.mxu1 %vm1709_vm3, %v1703_v14 }
 0x6fd   : > { %v1704_v15 = vpop.trf.xlu0 }
 0x6fe   : > { %2317 = vmatmul.mubr.msk.f32.gmra.mxu1 %vm1709_vm3, %v1704_v15 }
 0x701   : > { %v1705_v16 = vpop.trf.xlu0 }
 0x702   : > { %2319 = vmatprep.mubr.msk.f32.mxu1 %vm1709_vm3, %v1705_v16 }
 0x705   : > { %v1706_v17 = vpop.trf.xlu0 }
 0x706   : > { %2320 = vmatmul.mubr.msk.f32.gmra.mxu1 %vm1709_vm3, %v1706_v17 }
 0x709   : > { %v1707_v18 = vpop.trf.xlu0 }
 0x70a   : > { %2322 = vmatprep.mubr.msk.f32.mxu1 %vm1709_vm3, %v1707_v18 }
 0x70d   : > { %v1708_v19 = vpop.trf.xlu0 }
 0x70e   : > { %2323 = vmatmul.mubr.msk.f32.gmra.mxu1 %vm1709_vm3, %v1708_v19 }
 0x796   : > { %v2303_v20 = vpop.f32.mrf.mxu0 }
 0x798   : > { %v1824_v21 = vpop.f32.mrf.mxu0 }
 0x79e   : > { %v2306_v22 = vpop.f32.mrf.mxu0 }
 0x7a0   : > { %v1834_v24 = vpop.f32.mrf.mxu0 }
 0x7a6   : > { %v2309_v25 = vpop.f32.mrf.mxu0 }
 0x7a7   : > { %v1904_v35 = vmax.f32 %v2303_v20, %v2309_v25 }
 0x7a8   : > { %v1844_v28 = vpop.f32.mrf.mxu0 }
 0x7a9   : > { %v1903_v33 = vmax.f32 %v1824_v21, %v1844_v28 }
 0x7ae   : > { %v2312_v29 = vpop.f32.mrf.mxu0 }
 0x7af   : > { %v1906_v36 = vmax.f32 %v2306_v22, %v2312_v29 }
 0x7b0   : > { %v1854_v32 = vpop.f32.mrf.mxu0 }
 0x7b1   : > { %v1905_v37 = vmax.f32 %v1834_v24, %v1854_v32 }
 0x7b6   : > { %v2315_v23 = vpop.f32.mrf.mxu1 }
 0x7b7   : > { %v1908_v40 = vmax.f32 %v1904_v35, %v2315_v23 }
 0x7b8   : > { %v1864_v26 = vpop.f32.mrf.mxu1 }
 0x7b9   : > { %v1907_v38 = vmax.f32 %v1903_v33, %v1864_v26 }
 0x7be   : > { %v2318_v27 = vpop.f32.mrf.mxu1 }
 0x7bf   : > { %v1910_v41 = vmax.f32 %v1906_v36, %v2318_v27 }
 0x7c0   : > { %v1874_v30 = vpop.f32.mrf.mxu1 }
 0x7c1   : > { %v1909_v42 = vmax.f32 %v1905_v37, %v1874_v30 }
 0x7c6   : > { %v2321_v31 = vpop.f32.mrf.mxu1 }
 0x7c7   : > { %v1912_v45 = vmax.f32 %v1908_v40, %v2321_v31 }
 0x7c8   : > { %v1884_v34 = vpop.f32.mrf.mxu1 }
 0x7c9   : > { %v1911_v43 = vmax.f32 %v1907_v38, %v1884_v34 }
 0x7cb   : > { %v1915_v48 = vmax.f32 %v1911_v43, %v1912_v45 }
 0x7ce   : > { %v2324_v39 = vpop.f32.mrf.mxu1 }
 0x7cf   : > { %v1914_v46 = vmax.f32 %v1910_v41, %v2324_v39 }
 0x7d0   : > { %v1894_v44 = vpop.f32.mrf.mxu1 }
 0x7d1   : > { %v1913_v47 = vmax.f32 %v1909_v42, %v1894_v44 }
 0x7d3   : > { %v1916_v49 = vmax.f32 %v1913_v47, %v1914_v46 }
 0x7d5   : > { %v1917_v50 = vmax.f32 %v1915_v48, %v1916_v49 }
 0x7d7   : > { %v1918_v51 = vrot.slane %v1917_v50, 4 }
 0x7d9   : > { %v1919_v52 = vmax.f32 %v1917_v50, %v1918_v51 }
 0x7db   : > { %v1920_v53 = vrot.slane %v1919_v52, 2 }
 0x7dd   : > { %v1921_v54 = vmax.f32 %v1919_v52, %v1920_v53 }
 0x7df   : > { %v1922_v55 = vrot.slane %v1921_v54, 1 }
 0x7e1   : > { %v1923_v56 = vmax.f32 %v1921_v54, %v1922_v55 }
 0x7e3   : > { %v1924_v57 = vsub.f32 %v3169_v1, %v1923_v56 }
 0x7e5   : > { %v1925_v58 = vmul.f32 0.5, %v1924_v57 }
 0x7e7   : > { %v2149_v59 = vadd.f32 -0.01, %v1925_v58 }
 0x7e9   : > { %v1927_v61 = vmax.f32 %v2149_v59, 0.0 }
 0x7eb   : > { %v1929_v62 = vadd.f32 %v1928_v60, %v1927_v61 }
 0x7ed   : > { %1930 = vst [vmem:[%s2762_s23] sm:$0x1] %v1929_v62 }
 0x7ee PF: > { %s2150_s1 = sshll.u32 %s2652_s22, 4  ;;  %s1944_s10 = sshll.u32 %s2762_s23, 4  ;;  %s1945_s10 = int_to_ptr.vmem [resolvable:$true] %s1944_s10 }
 0x7ef   : > { %s1942_s26 = scalar_lea.hbm %s3232_s5, %s2150_s1  ;;  %s3279_s11 = sand.u32 1, %s2581_s19  }
 0x7f0   : > { %s1932_s13 = scalar_lea.sflag [#allocation6], %s3279_s11  ;;  %s2513_s4 = scalar_lea.vmem %s1945_s10, 16 }
 0x7f1   : > { %p2514_p12 = scmp.ne.s32.totalorder %s1945_s10, %s2513_s4  ;;  %s2600_s24 = smov [#allocation14]  }
 0x7f2   : > { %s2517_s17 = sshll.u32 %s2600_s24, 4  ;;  %s2518_s17 = int_to_ptr.vmem [resolvable:$false] %s2517_s17 }
 0x7f3   : > { %p2515_p10 = pnand %p2514_p12, %p2669_p5  ;;  %s2519_s15 = scalar_lea.vmem %s2518_s17, 32 }
 0x7f4   : > { %p2520_p4 = scmp.lt.s32.totalorder %s1945_s10, %s2518_s17  ;;  %p2521_p7 = scmp.lt.s32.totalorder %s2519_s15, %s2513_s4 }
 0x7f5   : > { %p2516_p9 = pneg %p2515_p10 }
 0x7f6   : > { %p2522_p8 = por %p2521_p7, %p2520_p4 }
 0x7f8   : > { %p2523_p6 = pnand %p2522_p8, %p2516_p9 }
 0x7fa   : > { %2526 = shalt.err (!%p2523_p6)
}
 0x7fb   : > { %s2527_s22 = scalar_lea.hbm %s1942_s26, 16  ;;  %s2531_s20 = scalar_lea.hbm %s3232_s5, 32 }
 0x7fc   : > { %p2528_p11 = scmp.ne.s32.totalorder %s1942_s26, %s2527_s22  ;;  %p2532_p2 = scmp.lt.s32.totalorder %s1942_s26, %s3232_s5 }
 0x7fd   : > { %p2533_p1 = scmp.lt.s32.totalorder %s2531_s20, %s2527_s22 }
 0x7fe   : > { %p2529_p13 = pnand %p2528_p11, %p2669_p5 }
 0x7ff   : > { %p2534_p3 = por %p2533_p1, %p2532_p2 }
 0x800   : > { %p2530_p0 = pneg %p2529_p13 }
 0x802   : > { %p2535_p12 = pnand %p2534_p3, %p2530_p0 }
 0x804   : > { %2538 = shalt.err (!%p2535_p12)
}
 0x805   : > { %2353 = dma.vmem_to_hbm [thread:$0]  (%p2669_p5), %s1945_s10, 16, %s1942_s26, %s1932_s13  }
 0x806 PF: > { %s3280_s30 = sld [smem:[#allocation23_spill]]  ;;  %p2385_p10 = scmp.ge.s32.totalorder %s2589_s21, 2 }
 0x807   : > { %s1956_s14 = sand.u32 1, %s2577_s18  }
 0x808   : > { %s1957_s16 = scalar_lea.sflag [#allocation6], %s1956_s14 }
 0x80c   : > { %p3281_p9 = scmp.ne.s32.totalorder %s3280_s30, 0 }
 0x80e   : > { %p2372_p4 = pnand %p2385_p10, %p3281_p9 }
 0x810   : > { %p2373_p7 = pneg %p2372_p4 }
 0x812   : > { %2572 = dma.done.wait (%p2373_p7), %s1957_s16, 16  }
 0x813   : > { %2574 = vsyncadd (%p2373_p7), %s1957_s16, 4294967280  ;;  %s3282_s21 = sld [smem:[#allocation21_spill]]  ;;  %s3285_s18 = smov %s2581_s19 }
 0x814   : > { %s3283_s12 = sld [smem:[#allocation20_spill]] }
 0x815   : > { %s3284_s20 = sld [smem:[#allocation22_spill]] }
 0x819   : > { %p19_p8 = scmp.ge.s32.totalorder %s3282_s21, 4  }
 0x81a   : > { %s3286_s19 = smov %s3283_s12 }
 0x81b   :  { %21 = sbr.rel (!%p19_p8) target bundleno = 13 (0xd), region = 139 }
 0x820   :  { %1961 = vsyncpa [#allocation5], 1 }
 0x821   :  { %1963 = vsyncpa [#allocation5 + $0x1], 1 }
 0x822   :  { %1964 = vsyncpa [#allocation6], 1 }
 0x823   :  { %1966 = vsyncpa [#allocation6 + $0x1], 1 }
 0x824   :  { %1967 = vsyncpa [#allocation7], 1 }
 0x825   :  { %1969 = vsyncpa [#allocation7 + $0x1], 1 }
 0x826   :  { %1970 = vsyncpa [#allocation8], 1 }
 0x827   :  { %1972 = vsyncpa [#allocation8 + $0x1], 1 }
 0x828   :  { %1973 = vsyncpa [#allocation11], 1 }

</bundles_post_ra>
